<compile_context>
chip_gen: v5e
topology: v5e:2x2
jax: 0.10.0
libtpu: 0.0.40
codegen_flags: <defaults>
</compile_context>

<pallas_src>
import jax
import jax.numpy as jnp
from jax.experimental import pallas as pl
from jax.experimental.pallas import tpu as pltpu


# Safe on all generations: < v7x 64 MiB physical, >= v5e/v6e defaults.
_VMEM_LIMIT_BYTES = 32 * 1024 * 1024


def _round_up(x, m):
    return ((x + m - 1) // m) * m


def _pick_row_tile(n_rows, row_bytes, budget_bytes=2 * 1024 * 1024, max_rows=512):
    """Row tile for the fused kernel: multiple of 8, bounded by a VMEM budget."""
    tile = max(1, budget_bytes // max(row_bytes, 1))
    tile = min(tile, max_rows)
    tile = max(8, (tile // 8) * 8)          # keep the output sublane dim dense
    tile = min(tile, _round_up(n_rows, 8))  # don't over-pad tiny batches
    return tile


# ----------------------------------------------------------------------------
# Kernel 1: fused backbone stand-in + head linears, tiled over rows N = B*T.
#   pooled = sum_{H*W} x            (1/(H*W) folded into wp)
#   feats  = pooled @ wp + bp       (backbone stand-in projection, C -> 2048)
#   net    = feats  @ we + be       (embedding linear)
#   logits = relu(net) @ wc + bc    (classifier, class dim padded to 128)
# ----------------------------------------------------------------------------
def _backbone_head_kernel(x_ref, wp_ref, bp_ref, we_ref, be_ref, wc_ref, bc_ref,
                          net_ref, logit_ref):
    # TODO(synk): real resnet50 backbone is not provided in the source; the
    # backbone stand-in is global avg-pool over H,W + a linear C->2048 (wp,bp).
    cdt = wp_ref.dtype                                   # matmul compute dtype
    # Spatial pooling: lane-dense reduction over the H*W (last) axis, in f32.
    pooled = jnp.sum(x_ref[...].astype(jnp.float32), axis=-1)          # (M, C)
    feats = jnp.dot(pooled.astype(cdt), wp_ref[...],
                    preferred_element_type=jnp.float32) + bp_ref[...]  # (M, F)
    net = jnp.dot(feats.astype(cdt), we_ref[...],
                  preferred_element_type=jnp.float32) + be_ref[...]    # (M, E)
    net_ref[...] = net
    logit_ref[...] = (
        jnp.dot(jnp.maximum(net, 0.0).astype(cdt), wc_ref[...],
                preferred_element_type=jnp.float32) + bc_ref[...])     # (M, Cp)


def _backbone_and_linears(x_rows, wp_s, bp, we, be, wc, bc, *, tile_n):
    n, c, hw = x_rows.shape
    f = wp_s.shape[1]
    e = we.shape[1]
    ncp = wc.shape[1]

    n_pad = _round_up(n, tile_n)
    if n_pad != n:
        x_rows = jnp.pad(x_rows, ((0, n_pad - n), (0, 0), (0, 0)))

    net, logits = pl.pallas_call(
        _backbone_head_kernel,
        out_shape=(jax.ShapeDtypeStruct((n_pad, e), jnp.float32),
                   jax.ShapeDtypeStruct((n_pad, ncp), jnp.float32)),
        grid_spec=pltpu.PrefetchScalarGridSpec(
            num_scalar_prefetch=0,
            grid=(n_pad // tile_n,),
            in_specs=[
                pl.BlockSpec((tile_n, c, hw), lambda i: (i, 0, 0)),
                pl.BlockSpec((c, f), lambda i: (0, 0)),     # resident weights
                pl.BlockSpec((1, f), lambda i: (0, 0)),
                pl.BlockSpec((f, e), lambda i: (0, 0)),     # resident weights
                pl.BlockSpec((1, e), lambda i: (0, 0)),
                pl.BlockSpec((e, ncp), lambda i: (0, 0)),   # resident weights
                pl.BlockSpec((1, ncp), lambda i: (0, 0)),
            ],
            out_specs=[
                pl.BlockSpec((tile_n, e), lambda i: (i, 0)),
                pl.BlockSpec((tile_n, ncp), lambda i: (i, 0)),
            ],
        ),
        compiler_params=pltpu.CompilerParams(
            dimension_semantics=("parallel",),
            vmem_limit_bytes=_VMEM_LIMIT_BYTES),
    )(x_rows, wp_s, bp, we, be, wc, bc)
    return net[:n], logits[:n]


# ----------------------------------------------------------------------------
# Kernel 2: F.normalize(net, p=2, dim=1) on (B, T, E), tiled over B.
# ----------------------------------------------------------------------------
def _l2norm_dim1_kernel(net_ref, out_ref):
    net = net_ref[...]                                    # (TB, T, E) f32
    ssq = jnp.sum(net * net, axis=1, keepdims=True)       # (TB, 1, E)
    # rsqrt(max(ssq, eps^2)) == 1 / max(||net||_2, eps), eps = 1e-12 as in
    # F.normalize; rsqrt uses the EUP slot instead of sqrt + per-element div.
    out_ref[...] = net * jax.lax.rsqrt(jnp.maximum(ssq, 1e-24))


def _l2_normalize_over_frames(net_bte, *, budget_bytes=4 * 1024 * 1024):
    b, t, e = net_bte.shape
    tile_b = min(b, max(1, budget_bytes // (t * e * 4)))
    b_pad = _round_up(b, tile_b)
    if b_pad != b:
        net_bte = jnp.pad(net_bte, ((0, b_pad - b), (0, 0), (0, 0)))

    out = pl.pallas_call(
        _l2norm_dim1_kernel,
        out_shape=jax.ShapeDtypeStruct((b_pad, t, e), jnp.float32),
        grid_spec=pltpu.PrefetchScalarGridSpec(
            num_scalar_prefetch=0,
            grid=(b_pad // tile_b,),
            in_specs=[pl.BlockSpec((tile_b, t, e), lambda i: (i, 0, 0))],
            out_specs=pl.BlockSpec((tile_b, t, e), lambda i: (i, 0, 0)),
        ),
        compiler_params=pltpu.CompilerParams(
            dimension_semantics=("parallel",),
            vmem_limit_bytes=_VMEM_LIMIT_BYTES),
    )(net_bte)
    return out[:b]


# ----------------------------------------------------------------------------
# End2End_AvgPooling forward
# ----------------------------------------------------------------------------
def end2end_avg_pooling(x, params, *, compute_dtype=jnp.bfloat16):
    assert x.ndim == 5
    b, t, c, h, w = x.shape
    e = params["we"].shape[1]
    num_classes = params["wc"].shape[1]

    # .view(-1, C, H, W), then flatten spatial so H*W is the lane dimension.
    # x itself is NOT cast in the wrapper (that would add a full HBM pass);
    # only the (reused) weights are pre-cast / pre-scaled / pre-padded.
    x_rows = x.reshape(b * t, c, h * w)

    ncp = max(128, _round_up(num_classes, 128))            # lane-dense classes
    wp_s = (params["wp"] * (1.0 / (h * w))).astype(compute_dtype)
    we_c = params["we"].astype(compute_dtype)
    wc_c = jnp.pad(params["wc"],
                   ((0, 0), (0, ncp - num_classes))).astype(compute_dtype)
    bc_p = jnp.pad(params["bc"], ((0, 0), (0, ncp - num_classes)))

    row_bytes = c * h * w * x_rows.dtype.itemsize
    tile_n = _pick_row_tile(b * t, row_bytes)

    net, logits_p = _backbone_and_linears(
        x_rows, wp_s, params["bp"], we_c, params["be"], wc_c, bc_p,
        tile_n=tile_n)

    net = net.reshape(b, t, e)                             # .view(B, T, -1)
    logits = logits_p[:, :num_classes].reshape(b, t, num_classes)
    net_norm = _l2_normalize_over_frames(net)              # F.normalize dim=1
    return net_norm, logits


# ----------------------------------------------------------------------------
# Deterministic parameter init (mirrors the PyTorch __init__ init schemes)
# ----------------------------------------------------------------------------
def init_params(key, c_in, feat=2048, embed=256, num_classes=16):
    k1, k2, k3 = jax.random.split(key, 3)
    # backbone stand-in projection C -> 2048
    wp = jax.random.normal(k1, (c_in, feat), jnp.float32) / jnp.sqrt(float(c_in))
    bp = jnp.zeros((1, feat), jnp.float32)
    # embeding: kaiming_normal_(mode='fan_out') -> std = sqrt(2 / embed); bias 0
    we = jax.random.normal(k2, (feat, embed), jnp.float32) * jnp.sqrt(2.0 / embed)
    be = jnp.zeros((1, embed), jnp.float32)
    # classifier: normal std=0.001; bias 0
    wc = jax.random.normal(k3, (embed, num_classes), jnp.float32) * 0.001
    bc = jnp.zeros((1, num_classes), jnp.float32)
    return dict(wp=wp, bp=bp, we=we, be=be, wc=wc, bc=bc)


def reference(x, p):
    b, t, c, h, w = x.shape
    pooled = jnp.mean(x.reshape(b * t, c, h * w), axis=-1)
    feats = jnp.dot(pooled, p["wp"], precision="highest") + p["bp"]
    feats = feats.reshape(b, t, -1)
    net = jnp.einsum("btf,fe->bte", feats, p["we"], precision="highest") + p["be"]
    nrm = jnp.maximum(jnp.sqrt(jnp.sum(net * net, axis=1, keepdims=True)), 1e-12)
    net_norm = net / nrm
    logits = (jnp.einsum("bte,ec->btc", jnp.maximum(net, 0.0), p["wc"],
                         precision="highest") + p["bc"])
    return net_norm, logits


if __name__ == "__main__":
    key = jax.random.PRNGKey(0)
    kx, kp = jax.random.split(key)

    # Small shapes: B=2 tracklets, T=4 frames, C=8 channels, 16x16 spatial.
    B, T, C, H, W = 2, 4, 8, 16, 16
    EMBED, NUM_CLASSES = 256, 16

    x = jax.random.normal(kx, (B, T, C, H, W), jnp.float32)
    params = init_params(kp, C, feat=2048, embed=EMBED, num_classes=NUM_CLASSES)

    net_norm, logits = end2end_avg_pooling(x, params)
    jax.block_until_ready((net_norm, logits))

    ref_norm, ref_logits = reference(x, params)
    assert net_norm.shape == (B, T, EMBED)
    assert logits.shape == (B, T, NUM_CLASSES)
    # Kernel uses bf16 MXU operands with f32 accumulation vs. an f32 'highest'
    # reference: ~0.5% relative error on net -> 2e-2 for the normalized output;
    # the classifier logits are tiny (std ~3e-3), so bound them absolutely.
    assert jnp.allclose(net_norm, ref_norm, rtol=2e-2, atol=2e-2)
    assert jnp.allclose(logits, ref_logits, rtol=2e-2, atol=5e-4)

    print("KERNEL_OK")
</pallas_src>

<mosaic_0001>
module attributes {stable_mosaic.version = 11 : i64} {
  func.func @_backbone_head_kernel(%arg0: i32, %arg1: memref<8x8x256xf32, #tpu.memory_space<vmem>>, %arg2: memref<8x2048xbf16, #tpu.memory_space<vmem>>, %arg3: memref<1x2048xf32, #tpu.memory_space<vmem>>, %arg4: memref<2048x256xbf16, #tpu.memory_space<vmem>>, %arg5: memref<1x256xf32, #tpu.memory_space<vmem>>, %arg6: memref<256x128xbf16, #tpu.memory_space<vmem>>, %arg7: memref<1x128xf32, #tpu.memory_space<vmem>>, %arg8: memref<8x256xf32, #tpu.memory_space<vmem>>, %arg9: memref<8x128xf32, #tpu.memory_space<vmem>>) attributes {dimension_semantics = [#tpu.dimension_semantics<parallel>], iteration_bounds = array<i64: 1>, scalar_prefetch = 0 : i64, scratch_operands = 0 : i64, tpu.core_type = #tpu.core_type<tc>, window_params = [{transform_indices = @transform_0, window_bounds = array<i64: 8, 8, 256>}, {pipeline_mode = #tpu.pipeline_mode<synchronous>, transform_indices = @transform_1, window_bounds = array<i64: 8, 2048>}, {pipeline_mode = #tpu.pipeline_mode<synchronous>, transform_indices = @transform_2, window_bounds = array<i64: 1, 2048>}, {pipeline_mode = #tpu.pipeline_mode<synchronous>, transform_indices = @transform_3, window_bounds = array<i64: 2048, 256>}, {pipeline_mode = #tpu.pipeline_mode<synchronous>, transform_indices = @transform_4, window_bounds = array<i64: 1, 256>}, {pipeline_mode = #tpu.pipeline_mode<synchronous>, transform_indices = @transform_5, window_bounds = array<i64: 256, 128>}, {pipeline_mode = #tpu.pipeline_mode<synchronous>, transform_indices = @transform_6, window_bounds = array<i64: 1, 128>}, {transform_indices = @transform_7, window_bounds = array<i64: 8, 256>}, {transform_indices = @transform_8, window_bounds = array<i64: 8, 128>}]} {
    %c0 = arith.constant 0 : index
    %c0_0 = arith.constant 0 : index
    %c0_1 = arith.constant 0 : index
    %0 = vector.load %arg1[%c0, %c0_0, %c0_1] : memref<8x8x256xf32, #tpu.memory_space<vmem>>, vector<8x8x256xf32>
    %cst = arith.constant dense<0.000000e+00> : vector<8x8xf32>
    %1 = vector.multi_reduction <add>, %0, %cst [2] : vector<8x8x256xf32> to vector<8x8xf32>
    %2 = arith.truncf %1 : vector<8x8xf32> to vector<8x8xbf16>
    %c0_2 = arith.constant 0 : index
    %c0_3 = arith.constant 0 : index
    %3 = vector.load %arg2[%c0_2, %c0_3] : memref<8x2048xbf16, #tpu.memory_space<vmem>>, vector<8x2048xbf16>
    %cst_4 = arith.constant dense<0.000000e+00> : vector<8x2048xf32>
    %4 = tpu.matmul %2, %3, %cst_4 {dimension_numbers = #tpu.dot_dimension_numbers<[1], [0], [0], [1], [0, 0, 1, 1], [], []>} : vector<8x8xbf16>, vector<8x2048xbf16>, vector<8x2048xf32> -> vector<8x2048xf32>
    %c0_5 = arith.constant 0 : index
    %c0_6 = arith.constant 0 : index
    %5 = vector.load %arg3[%c0_5, %c0_6] : memref<1x2048xf32, #tpu.memory_space<vmem>>, vector<1x2048xf32>
    %6 = vector.broadcast %5 : vector<1x2048xf32> to vector<8x2048xf32>
    %7 = arith.addf %4, %6 : vector<8x2048xf32>
    %8 = arith.truncf %7 : vector<8x2048xf32> to vector<8x2048xbf16>
    %c0_7 = arith.constant 0 : index
    %c0_8 = arith.constant 0 : index
    %9 = vector.load %arg4[%c0_7, %c0_8] : memref<2048x256xbf16, #tpu.memory_space<vmem>>, vector<2048x256xbf16>
    %cst_9 = arith.constant dense<0.000000e+00> : vector<8x256xf32>
    %10 = tpu.matmul %8, %9, %cst_9 {dimension_numbers = #tpu.dot_dimension_numbers<[1], [0], [0], [1], [0, 0, 1, 1], [], []>} : vector<8x2048xbf16>, vector<2048x256xbf16>, vector<8x256xf32> -> vector<8x256xf32>
    %c0_10 = arith.constant 0 : index
    %c0_11 = arith.constant 0 : index
    %11 = vector.load %arg5[%c0_10, %c0_11] : memref<1x256xf32, #tpu.memory_space<vmem>>, vector<1x256xf32>
    %12 = vector.broadcast %11 : vector<1x256xf32> to vector<8x256xf32>
    %13 = arith.addf %10, %12 : vector<8x256xf32>
    %c0_12 = arith.constant 0 : index
    %c0_13 = arith.constant 0 : index
    %14 = vector.load %arg8[%c0_12, %c0_13] : memref<8x256xf32, #tpu.memory_space<vmem>>, vector<8x256xf32>
    tpu.vector_store %arg8[%c0_12, %c0_13], %13 {strides = array<i32>} : memref<8x256xf32, #tpu.memory_space<vmem>>, vector<8x256xf32>,
    %cst_14 = arith.constant 0.000000e+00 : f32
    %15 = vector.broadcast %cst_14 : f32 to vector<8x256xf32>
    %16 = arith.maximumf %13, %15 : vector<8x256xf32>
    %17 = arith.truncf %16 : vector<8x256xf32> to vector<8x256xbf16>
    %c0_15 = arith.constant 0 : index
    %c0_16 = arith.constant 0 : index
    %18 = vector.load %arg6[%c0_15, %c0_16] : memref<256x128xbf16, #tpu.memory_space<vmem>>, vector<256x128xbf16>
    %cst_17 = arith.constant dense<0.000000e+00> : vector<8x128xf32>
    %19 = tpu.matmul %17, %18, %cst_17 {dimension_numbers = #tpu.dot_dimension_numbers<[1], [0], [0], [1], [0, 0, 1, 1], [], []>} : vector<8x256xbf16>, vector<256x128xbf16>, vector<8x128xf32> -> vector<8x128xf32>
    %c0_18 = arith.constant 0 : index
    %c0_19 = arith.constant 0 : index
    %20 = vector.load %arg7[%c0_18, %c0_19] : memref<1x128xf32, #tpu.memory_space<vmem>>, vector<1x128xf32>
    %21 = vector.broadcast %20 : vector<1x128xf32> to vector<8x128xf32>
    %22 = arith.addf %19, %21 : vector<8x128xf32>
    %c0_20 = arith.constant 0 : index
    %c0_21 = arith.constant 0 : index
    %23 = vector.load %arg9[%c0_20, %c0_21] : memref<8x128xf32, #tpu.memory_space<vmem>>, vector<8x128xf32>
    tpu.vector_store %arg9[%c0_20, %c0_21], %22 {strides = array<i32>} : memref<8x128xf32, #tpu.memory_space<vmem>>, vector<8x128xf32>,
    return
  }
  func.func @transform_0(%arg0: i32) -> (i32, i32, i32) {
    %c0_i32 = arith.constant 0 : i32
    %c0_i32_0 = arith.constant 0 : i32
    %c0_i32_1 = arith.constant 0 : i32
    return %arg0, %c0_i32, %c0_i32_0 : i32, i32, i32
  }
  func.func @transform_1(%arg0: i32) -> (i32, i32) {
    %c0_i32 = arith.constant 0 : i32
    %c0_i32_0 = arith.constant 0 : i32
    %c0_i32_1 = arith.constant 0 : i32
    return %c0_i32, %c0_i32_0 : i32, i32
  }
  func.func @transform_2(%arg0: i32) -> (i32, i32) {
    %c0_i32 = arith.constant 0 : i32
    %c0_i32_0 = arith.constant 0 : i32
    %c0_i32_1 = arith.constant 0 : i32
    return %c0_i32, %c0_i32_0 : i32, i32
  }
  func.func @transform_3(%arg0: i32) -> (i32, i32) {
    %c0_i32 = arith.constant 0 : i32
    %c0_i32_0 = arith.constant 0 : i32
    %c0_i32_1 = arith.constant 0 : i32
    return %c0_i32, %c0_i32_0 : i32, i32
  }
  func.func @transform_4(%arg0: i32) -> (i32, i32) {
    %c0_i32 = arith.constant 0 : i32
    %c0_i32_0 = arith.constant 0 : i32
    %c0_i32_1 = arith.constant 0 : i32
    return %c0_i32, %c0_i32_0 : i32, i32
  }
  func.func @transform_5(%arg0: i32) -> (i32, i32) {
    %c0_i32 = arith.constant 0 : i32
    %c0_i32_0 = arith.constant 0 : i32
    %c0_i32_1 = arith.constant 0 : i32
    return %c0_i32, %c0_i32_0 : i32, i32
  }
  func.func @transform_6(%arg0: i32) -> (i32, i32) {
    %c0_i32 = arith.constant 0 : i32
    %c0_i32_0 = arith.constant 0 : i32
    %c0_i32_1 = arith.constant 0 : i32
    return %c0_i32, %c0_i32_0 : i32, i32
  }
  func.func @transform_7(%arg0: i32) -> (i32, i32) {
    %c0_i32 = arith.constant 0 : i32
    %c0_i32_0 = arith.constant 0 : i32
    return %arg0, %c0_i32 : i32, i32
  }
  func.func @transform_8(%arg0: i32) -> (i32, i32) {
    %c0_i32 = arith.constant 0 : i32
    %c0_i32_0 = arith.constant 0 : i32
    return %arg0, %c0_i32 : i32, i32
  }
}

</mosaic_0001>

<bundles_post_ra>
// kernel: tpu_custom_call.1
= control target key start
LH: loop header
LB: loop body
LE: loop exit
PB: predicated region body
PF: predicated region fallthrough
CT: control target
= control target key end

     0   :  { %14 = vsyncpa [#allocation3], 0  ;;  %s4552_s0 = inlined_call_operand.hbm [shape: f32[8,8,256], index: 0, kind: input, shape index: {}]   ;;  %s4553_s1 = inlined_call_operand.hbm [shape: bf16[8,2048], index: 1, kind: input, shape index: {}]   ;;  %s4554_s2 = inlined_call_operand.hbm [shape: f32[1,2048], index: 2, kind: input, shape index: {}]   ;;  %s4555_s3 = inlined_call_operand.hbm [shape: bf16[2048,256], index: 3, kind: input, shape index: {}]   ;;  %s4556_s4 = inlined_call_operand.vmem [shape: f32[1,256], index: 4, kind: input, shape index: {}]   ;;  %s4557_s5 = inlined_call_operand.hbm [shape: bf16[256,128], index: 5, kind: input, shape index: {}]   ;;  %s4558_s6 = inlined_call_operand.vmem [shape: f32[1,128], index: 6, kind: input, shape index: {}]   ;;  %s4559_s7 = inlined_call_operand.hbm [shape: f32[8,256], index: 7, kind: output, shape index: {0}]   ;;  %s4560_s8 = inlined_call_operand.hbm [shape: f32[8,128], index: 8, kind: output, shape index: {1}]  }
   0x1   :  { %15 = vsyncpa [#allocation6], 0 }
   0x2   :  { %16 = vsyncpa [#allocation9], 0 }
   0x3   :  { %17 = vsyncpa [#allocation4], 0  ;;  %s37_s29 = sshll.u32 %s4553_s1, 4  ;;  %s38_s29 = int_to_ptr.hbm [resolvable:$true] %s37_s29 }
   0x4   :  { %18 = vsyncpa [#allocation13], 0  ;;  %s4281_s30 = smov [#allocation5]   ;;  %s58_s12 = sshll.u32 %s4555_s3, 4  ;;  %s59_s12 = int_to_ptr.hbm [resolvable:$true] %s58_s12 }
   0x5   :  { %s39_s9 = sshll.u32 %s4281_s30, 4  ;;  %s4282_s13 = smov [#allocation8]   ;;  %s40_s9 = int_to_ptr.vmem [resolvable:$true] %s39_s9 }
   0x6   :  { %42 = dma.hbm_to_vmem [thread:$0]  %s38_s29, 1024, %s40_s9, [#allocation6]  }
   0x7   :  { %s60_s14 = sshll.u32 %s4282_s13, 4  ;;  %s4283_s15 = smov 128   ;;  %s61_s14 = int_to_ptr.vmem [resolvable:$true] %s60_s14 }
   0x8   :  { %s4284_s16 = smov 8   ;;  %s23_s1 = sshll.u32 %s4552_s0, 4  ;;  %s24_s1 = int_to_ptr.hbm [resolvable:$true] %s23_s1 }
   0x9   :  { %66 = dma.hbm_to_vmem [thread:$0]  %s59_s12, 32768, %s61_s14, [#allocation9], %s4283_s15, %s4283_s15, %s4284_s16  }
   0xa   :  { %s4285_s19 = smov [#allocation2]   ;;  %s48_s3 = sshll.u32 %s4554_s2, 4  ;;  %s49_s3 = int_to_ptr.hbm [resolvable:$true] %s48_s3 }
   0xb   :  { %s25_s20 = sshll.u32 %s4285_s19, 4  ;;  %s4286_s23 = smov 256   ;;  %s26_s20 = int_to_ptr.vmem [resolvable:$true] %s25_s20 }
   0xc   :  { %s4287_s24 = smov 16   ;;  %s4288_s25 = smov [#allocation7]  }
   0xd   :  { %31 = dma.hbm_to_vmem [thread:$0]  %s24_s1, 2048, %s26_s20, [#allocation3], %s4286_s23, %s4286_s23, %s4287_s24  }
   0xe   :  { %s50_s26 = sshll.u32 %s4288_s25, 4  ;;  %s73_s29 = sshll.u32 %s4557_s5, 4  ;;  %s51_s26 = int_to_ptr.vmem [resolvable:$true] %s50_s26  ;;  %s74_s29 = int_to_ptr.hbm [resolvable:$true] %s73_s29 }
   0xf   :  { %53 = dma.hbm_to_vmem [thread:$0]  %s49_s3, 256, %s51_s26, [#allocation6]  }
  0x10   :  { %s4289_s0 = smov [#allocation10]   ;;  %s4290_s9 = smov 64  }
  0x11   :  { %s75_s30 = sshll.u32 %s4289_s0, 4  ;;  %s4291_s10 = smov 4   ;;  %s76_s30 = int_to_ptr.vmem [resolvable:$true] %s75_s30 }
  0x12   :  { %81 = dma.hbm_to_vmem [thread:$0]  %s74_s29, 2048, %s76_s30, [#allocation9], %s4290_s9, %s4290_s9, %s4291_s10  }
  0x13   :  { %4271 = dma.done.wait [#allocation3], 2048  }
  0x14   :  { %4272 = vsyncadd [#allocation3], 4294965248 }
  0x15   :  { %4273 = dma.done.wait [#allocation6], 1280  }
  0x16   :  { %4274 = vsyncadd [#allocation6], 4294966016 }
  0x17   :  { %4275 = dma.done.wait [#allocation9], 34816  }
  0x18   :  { %4276 = vsyncadd [#allocation9], 4294932480  ;;  %v105_v0 = vld [vmem:[#allocation2] sm:$0xff]  ;;  %v106_v1 = vld [vmem:[#allocation2 + $0x8] sm:$0xff]  ;;  %vm282_vm0 = vcmask 1043456   ;;  %v213_v55 = vlaneseq  ;;  %vm223_vm1 = vcmask 1041409  }
  0x19   :  { %v109_v2 = vld [vmem:[#allocation2 + $0x20] sm:$0xff]  ;;  %v121_v3 = vadd.f32 %v106_v1, %v105_v0  ;;  %v110_v4 = vld [vmem:[#allocation2 + $0x28] sm:$0xff]  ;;  %v107_v9 = vld [vmem:[#allocation2 + $0x10] sm:$0xff]  ;;  %vm225_vm2 = vcmask 1042434   ;;  %vm227_vm3 = vcmask 1043459   ;;  %vm229_vm4 = vcmask 1044484  }
  0x1a   :  { %v113_v5 = vld [vmem:[#allocation2 + $0x40] sm:$0xff]  ;;  %v114_v6 = vld [vmem:[#allocation2 + $0x48] sm:$0xff]  ;;  %v127_v7 = vadd.f32 %v110_v4, %v109_v2  ;;  %v108_v10 = vld [vmem:[#allocation2 + $0x18] sm:$0xff]  ;;  %v214_v59 = vand.u32 127, %v213_v55  ;;  %vm231_vm5 = vcmask 1045509   ;;  %vm233_vm6 = vcmask 1046534  }
  0x1b   :  { %v133_v8 = vadd.f32 %v114_v6, %v113_v5  ;;  %122 = vadd.xlane.f32.xlu0 %v121_v3  ;;  %v111_v11 = vld [vmem:[#allocation2 + $0x30] sm:$0xff]  ;;  %v112_v12 = vld [vmem:[#allocation2 + $0x38] sm:$0xff]  ;;  %v124_v15 = vadd.f32 %v108_v10, %v107_v9  ;;  %v117_v18 = vld [vmem:[#allocation2 + $0x60] sm:$0xff]  ;;  %vm235_vm7 = vcmask 1047559   ;;  %vm278_vm8 = vcmask 64512   ;;  %s2685_s14 = sshll.u32 %s4559_s7, 4  ;;  %s2686_s14 = int_to_ptr.hbm [resolvable:$true] %s2685_s14 }
  0x1c   :  { %128 = vadd.xlane.f32.xlu1 %v127_v7  ;;  %v115_v13 = vld [vmem:[#allocation2 + $0x50] sm:$0xff]  ;;  %v116_v14 = vld [vmem:[#allocation2 + $0x58] sm:$0xff]  ;;  %v130_v16 = vadd.f32 %v112_v12, %v111_v11  ;;  %v118_v19 = vld [vmem:[#allocation2 + $0x68] sm:$0xff]  ;;  %s4293_s17 = smov [#allocation12]   ;;  %s2696_s20 = sshll.u32 %s4560_s8, 4  ;;  %s2697_s20 = int_to_ptr.hbm [resolvable:$true] %s2696_s20 }
  0x1d   :  { %134 = vadd.xlane.f32.xlu2 %v133_v8  ;;  %v136_v17 = vadd.f32 %v116_v14, %v115_v13  ;;  %v119_v20 = vld [vmem:[#allocation2 + $0x70] sm:$0xff]  ;;  %v120_v21 = vld [vmem:[#allocation2 + $0x78] sm:$0xff]  ;;  %v139_v22 = vadd.f32 %v118_v19, %v117_v18  ;;  %v153_v24 = vld [vmem:[#allocation5] sm:$0xff]  ;;  %s2694_s18 = sshll.u32 %s4293_s17, 4  ;;  %s2695_s18 = int_to_ptr.vmem [resolvable:$true] %s2694_s18 }
  0x1e   :  { %v142_v23 = vadd.f32 %v120_v21, %v119_v20  ;;  %v155_v25 = vld [vmem:[#allocation5 + $0x10] sm:$0xff]  ;;  %v246_v26 = vunpack.c.l.b16 %v153_v24  ;;  %v247_v27 = vunpack.c.h.b16 %v153_v24  ;;  %v154_v38 = vld [vmem:[#allocation5 + $0x8] sm:$0xff]  ;;  %v157_v39 = vld [vmem:[#allocation5 + $0x20] sm:$0xff] }
  0x1f   :  { %v250_v28 = vunpack.c.l.b16 %v155_v25  ;;  %v251_v29 = vunpack.c.h.b16 %v155_v25  ;;  %v248_v40 = vunpack.c.l.b16 %v154_v38  ;;  %v249_v41 = vunpack.c.h.b16 %v154_v38  ;;  %v156_v13 = vld [vmem:[#allocation5 + $0x18] sm:$0xff] }
  0x20   :  { %v262_v30 = vpack.c.b16 %v246_v26, %v246_v26  ;;  %v263_v31 = vpack.c.b16 %v247_v27, %v247_v27  ;;  %v254_v42 = vunpack.c.l.b16 %v157_v39  ;;  %v255_v43 = vunpack.c.h.b16 %v157_v39 }
  0x21   :  { %v266_v32 = vpack.c.b16 %v250_v28, %v250_v28  ;;  %v267_v33 = vpack.c.b16 %v251_v29, %v251_v29  ;;  %v264_v44 = vpack.c.b16 %v248_v40, %v248_v40  ;;  %v265_v45 = vpack.c.b16 %v249_v41, %v249_v41 }
  0x22   :  { %v284_v34 = vsel %vm282_vm0, %v262_v30, 0  ;;  %v287_v35 = vsel %vm282_vm0, %v263_v31, 0  ;;  %v270_v46 = vpack.c.b16 %v254_v42, %v254_v42  ;;  %v271_v47 = vpack.c.b16 %v255_v43, %v255_v43 }
  0x23   :  { %125 = vadd.xlane.f32.xlu0 %v124_v15  ;;  %v296_v36 = vsel %vm282_vm0, %v266_v32, 0  ;;  %338 = vmatpush.bf16.msra.mxu2 %v284_v34  ;;  %v299_v37 = vsel %vm282_vm0, %v267_v33, 0  ;;  %v290_v51 = vsel %vm282_vm0, %v264_v44, 0  ;;  %v293_v52 = vsel %vm282_vm0, %v265_v45, 0  ;;  %v158_v44 = vld [vmem:[#allocation5 + $0x28] sm:$0xff] }
  0x24   :  { %131 = vadd.xlane.f32.xlu1 %v130_v16  ;;  %351 = vmatpush.bf16.msra.mxu3 %v287_v35  ;;  %v308_v53 = vsel %vm282_vm0, %v270_v46, 0  ;;  %v311_v54 = vsel %vm282_vm0, %v271_v47, 0  ;;  %v159_v16 = vld [vmem:[#allocation5 + $0x30] sm:$0xff]  ;;  %v253_v24 = vunpack.c.h.b16 %v156_v13  ;;  %v256_v45 = vunpack.c.l.b16 %v158_v44 }
  0x25   :  { %137 = vadd.xlane.f32.xlu2 %v136_v17  ;;  %390 = vmatpush.bf16.msra.mxu0 %v296_v36  ;;  %v258_v27 = vunpack.c.l.b16 %v159_v16  ;;  %v259_v28 = vunpack.c.h.b16 %v159_v16  ;;  %v257_v46 = vunpack.c.h.b16 %v158_v44  ;;  %v2915_v16 = vld [vmem:[#allocation8 + $0x170] sm:$0xf] }
  0x26   :  { %403 = vmatpush.bf16.msra.mxu1 %v299_v37  ;;  %v269_v34 = vpack.c.b16 %v253_v24, %v253_v24  ;;  %v272_v47 = vpack.c.b16 %v256_v45, %v256_v45  ;;  %v2819_v24 = vld [vmem:[#allocation8 + $0xb0] sm:$0xf]  ;;  %v3876_v45 = vld [vmem:[#allocation8 + $0x1d4] sm:$0xf0] }
  0x27   :  { %364 = vmatpush.bf16.msrb.mxu2 %v290_v51  ;;  %v274_v36 = vpack.c.b16 %v258_v27, %v258_v27  ;;  %v275_v37 = vpack.c.b16 %v259_v28, %v259_v28  ;;  %v160_v51 = vld [vmem:[#allocation5 + $0x38] sm:$0xff]  ;;  %v2907_v28 = vld [vmem:[#allocation8 + $0x160] sm:$0xf]  ;;  %v2963_v44 = vld [vmem:[#allocation8 + $0x1d0] sm:$0xf] }
  0x28   :  { %377 = vmatpush.bf16.msrb.mxu3 %v293_v52  ;;  %v305_v41 = vsel %vm282_vm0, %v269_v34, 0  ;;  %v260_v52 = vunpack.c.l.b16 %v160_v51  ;;  %v3822_v34 = vld [vmem:[#allocation8 + $0x24] sm:$0xf0] }
  0x29   :  { %442 = vmatpush.bf16.msrb.mxu0 %v308_v53  ;;  %v320_v42 = vsel %vm282_vm0, %v274_v36, 0  ;;  %v323_v43 = vsel %vm282_vm0, %v275_v37, 0  ;;  %v261_v53 = vunpack.c.h.b16 %v160_v51  ;;  %v2811_v36 = vld [vmem:[#allocation8 + $0xa0] sm:$0xf]  ;;  %v3836_v51 = vld [vmem:[#allocation8 + $0x94] sm:$0xf0] }
  0x2a   :  { %455 = vmatpush.bf16.msrb.mxu1 %v311_v54  ;;  %v276_v54 = vpack.c.b16 %v260_v52, %v260_v52  ;;  %v2964_v52 = vor.u32 %v3876_v45, %v2963_v44  ;;  %v3850_v44 = vld [vmem:[#allocation8 + $0x104] sm:$0xf0]  ;;  %v2923_v45 = vld [vmem:[#allocation8 + $0x180] sm:$0xf] }
  0x2b   :  { %140 = vadd.xlane.f32.xlu0 %v139_v22  ;;  %v277_v55 = vpack.c.b16 %v261_v53, %v261_v53  ;;  %v2891_v53 = vld [vmem:[#allocation8 + $0x140] sm:$0xf] }
  0x2c   :  { %143 = vadd.xlane.f32.xlu1 %v142_v23  ;;  %v252_v23 = vunpack.c.l.b16 %v156_v13  ;;  %v3826_v13 = vld [vmem:[#allocation8 + $0x44] sm:$0xf0] }
  0x2e   :  { %v268_v33 = vpack.c.b16 %v252_v23, %v252_v23 }
  0x30   :  { %v302_v40 = vsel %vm282_vm0, %v268_v33, 0  ;;  %v2747_v33 = vld [vmem:[#allocation8 + $0x20] sm:$0xf] }
  0x8e   :  { %v123_v48 = vpop.xlane.xlu0 %122 }
  0x8f   :  { %v129_v49 = vpop.xlane.xlu1 %128  ;;  %v145_v56 = vpack.c.bf16 %v123_v48, %v123_v48  ;;  %v273_v48 = vpack.c.b16 %v257_v46, %v257_v46  ;;  %v2739_v46 = vld [vmem:[#allocation8 + $0x10] sm:$0xf] }
  0x90   :  { %v135_v50 = vpop.xlane.xlu2 %134  ;;  %v147_v57 = vpack.c.bf16 %v129_v49, %v129_v49  ;;  %v314_v49 = vsel %vm282_vm0, %v272_v47, 0  ;;  %v3820_v47 = vld [vmem:[#allocation8 + $0x14] sm:$0xf0] }
  0x91   :  { %v205_v60 = vunpack.c.l.b16 %v145_v56  ;;  %v149_v61 = vpack.c.bf16 %v135_v50, %v135_v50  ;;  %v317_v50 = vsel %vm282_vm0, %v273_v48, 0  ;;  %v326_v56 = vsel %vm282_vm0, %v276_v54, 0  ;;  %v3858_v54 = vld [vmem:[#allocation8 + $0x144] sm:$0xf0] }
  0x92   :  { %v207_v1 = vunpack.c.l.b16 %v147_v57  ;;  %v329_v57 = vsel %vm282_vm0, %v277_v55, 0  ;;  %v2740_v55 = vor.u32 %v3820_v47, %v2739_v46  ;;  %v3866_v46 = vld [vmem:[#allocation8 + $0x184] sm:$0xf0]  ;;  %v3171_v47 = vld [vmem:[#allocation8 + $0x370] sm:$0xf] }
  0x93   :  { %v215_v6 = vperm.slane %v205_v60, %v214_v59  ;;  %v209_v7 = vunpack.c.l.b16 %v149_v61  ;;  %v2851_v60 = vld [vmem:[#allocation8 + $0xf0] sm:$0xf] }
  0x94   :  { %v217_v9 = vperm.slane %v207_v1, %v214_v59 }
  0x95   :  { %v219_v17 = vperm.slane %v209_v7, %v214_v59  ;;  %v3828_v7 = vld [vmem:[#allocation8 + $0x54] sm:$0xf0] }
  0x96   :  { %v126_v58 = vpop.xlane.xlu0 %125 }
  0x97   :  { %v146_v62 = vpack.c.bf16 %v126_v58, %v126_v58  ;;  %v132_v63 = vpop.xlane.xlu1 %131  ;;  %v2787_v58 = vld [vmem:[#allocation8 + $0x70] sm:$0xf] }
  0x98   :  { %v138_v0 = vpop.xlane.xlu2 %137  ;;  %v148_v2 = vpack.c.bf16 %v132_v63, %v132_v63  ;;  %v2779_v63 = vld [vmem:[#allocation8 + $0x60] sm:$0xf] }
  0x99   :  { %v150_v3 = vpack.c.bf16 %v138_v0, %v138_v0  ;;  %v206_v4 = vunpack.c.l.b16 %v146_v62  ;;  %v3848_v62 = vld [vmem:[#allocation8 + $0xf4] sm:$0xf0]  ;;  %v3830_v0 = vld [vmem:[#allocation8 + $0x64] sm:$0xf0] }
  0x9a   :  { %v208_v5 = vunpack.c.l.b16 %v148_v2  ;;  %v2852_v1 = vor.u32 %v3848_v62, %v2851_v60  ;;  %v2843_v2 = vld [vmem:[#allocation8 + $0xe0] sm:$0xf]  ;;  %v3834_v62 = vld [vmem:[#allocation8 + $0x84] sm:$0xf0] }
  0x9b   :  { %v216_v8 = vperm.slane %v206_v4, %v214_v59  ;;  %v210_v11 = vunpack.c.l.b16 %v150_v3  ;;  %v3846_v3 = vld [vmem:[#allocation8 + $0xe4] sm:$0xf0]  ;;  %v2780_v4 = vor.u32 %v3830_v0, %v2779_v63  ;;  %v2892_v63 = vor.u32 %v3858_v54, %v2891_v53  ;;  %v3011_v54 = vld [vmem:[#allocation8 + $0x230] sm:$0xf] }
  0x9c   :  { %v218_v10 = vperm.slane %v208_v5, %v214_v59  ;;  %v2844_v5 = vor.u32 %v3846_v3, %v2843_v2  ;;  %v3896_v2 = vld [vmem:[#allocation8 + $0x274] sm:$0xf0]  ;;  %v3107_v3 = vld [vmem:[#allocation8 + $0x2f0] sm:$0xf] }
  0x9d   :  { %v224_v12 = vsel %vm223_vm1, %v216_v8, %v215_v6  ;;  %v220_v21 = vperm.slane %v210_v11, %v214_v59  ;;  %v2771_v6 = vld [vmem:[#allocation8 + $0x50] sm:$0xf] }
  0x9e   :  { %v226_v14 = vsel %vm225_vm2, %v217_v9, %v224_v12  ;;  %v141_v15 = vpop.xlane.xlu0 %140  ;;  %v2835_v8 = vld [vmem:[#allocation8 + $0xd0] sm:$0xf]  ;;  %v3844_v9 = vld [vmem:[#allocation8 + $0xd4] sm:$0xf0]  ;;  %v2763_v12 = vld [vmem:[#allocation8 + $0x40] sm:$0xf] }
  0x9f   :  { %v228_v18 = vsel %vm227_vm3, %v218_v10, %v226_v14  ;;  %v151_v19 = vpack.c.bf16 %v141_v15, %v141_v15  ;;  %v144_v20 = vpop.xlane.xlu1 %143  ;;  %v2772_v10 = vor.u32 %v3828_v7, %v2771_v6  ;;  %v2836_v11 = vor.u32 %v3844_v9, %v2835_v8  ;;  %v2827_v14 = vld [vmem:[#allocation8 + $0xc0] sm:$0xf]  ;;  %v3842_v15 = vld [vmem:[#allocation8 + $0xc4] sm:$0xf0]  ;;  %v2883_v6 = vld [vmem:[#allocation8 + $0x130] sm:$0xf] }
  0xa0   :  { %v152_v22 = vpack.c.bf16 %v144_v20, %v144_v20  ;;  %v230_v25 = vsel %vm229_vm4, %v219_v17, %v228_v18  ;;  %v3864_v17 = vld [vmem:[#allocation8 + $0x174] sm:$0xf0]  ;;  %v2764_v18 = vor.u32 %v3826_v13, %v2763_v12  ;;  %v2828_v23 = vor.u32 %v3842_v15, %v2827_v14  ;;  %v2947_v8 = vld [vmem:[#allocation8 + $0x1b0] sm:$0xf]  ;;  %v3035_v14 = vld [vmem:[#allocation8 + $0x260] sm:$0xf] }
  0xa1   :  { %v211_v26 = vunpack.c.l.b16 %v151_v19  ;;  %v232_v31 = vsel %vm231_vm5, %v220_v21, %v230_v25  ;;  %v2979_v19 = vld [vmem:[#allocation8 + $0x1f0] sm:$0xf]  ;;  %v3880_v20 = vld [vmem:[#allocation8 + $0x1f4] sm:$0xf0]  ;;  %v2916_v25 = vor.u32 %v3864_v17, %v2915_v16  ;;  %v3894_v15 = vld [vmem:[#allocation8 + $0x264] sm:$0xf0] }
  0xa2   :  { %v212_v29 = vunpack.c.l.b16 %v152_v22  ;;  %v2755_v21 = vld [vmem:[#allocation8 + $0x30] sm:$0xf]  ;;  %v3824_v22 = vld [vmem:[#allocation8 + $0x34] sm:$0xf0]  ;;  %v2980_v27 = vor.u32 %v3880_v20, %v2979_v19  ;;  %v3099_v16 = vld [vmem:[#allocation8 + $0x2e0] sm:$0xf] }
  0xa3   :  { %v221_v30 = vperm.slane %v211_v26, %v214_v59  ;;  %v3840_v26 = vld [vmem:[#allocation8 + $0xb4] sm:$0xf0]  ;;  %v2875_v19 = vld [vmem:[#allocation8 + $0x120] sm:$0xf]  ;;  %v3854_v20 = vld [vmem:[#allocation8 + $0x124] sm:$0xf0] }
  0xa4   :  { %v222_v32 = vperm.slane %v212_v29, %v214_v59  ;;  %v3832_v59 = vld [vmem:[#allocation8 + $0x74] sm:$0xf0]  ;;  %v3862_v29 = vld [vmem:[#allocation8 + $0x164] sm:$0xf0] }
  0xa5   :  { %v234_v35 = vsel %vm233_vm6, %v221_v30, %v232_v31  ;;  %v2788_v61 = vor.u32 %v3832_v59, %v2787_v58  ;;  %v2756_v30 = vor.u32 %v3824_v22, %v2755_v21  ;;  %v2971_v31 = vld [vmem:[#allocation8 + $0x1e0] sm:$0xf]  ;;  %v2908_v37 = vor.u32 %v3862_v29, %v2907_v28  ;;  %v3818_v59 = vld [vmem:[#allocation8 + $0x4] sm:$0xf0]  ;;  %v3856_v7 = vld [vmem:[#allocation8 + $0x134] sm:$0xf0] }
  0xa6   :  { %v236_v38 = vsel %vm235_vm7, %v222_v32, %v234_v35  ;;  %v3878_v32 = vld [vmem:[#allocation8 + $0x1e4] sm:$0xf0]  ;;  %v2820_v35 = vor.u32 %v3840_v26, %v2819_v24  ;;  %v2731_v58 = vld [vmem:[#allocation8] sm:$0xf]  ;;  %v3872_v9 = vld [vmem:[#allocation8 + $0x1b4] sm:$0xf0]  ;;  %v2884_v13 = vor.u32 %v3856_v7, %v2883_v6 }
  0xa7   :  { %v4362_v39 = vpack.c.b16 %v236_v38, %v236_v38  ;;  %v3838_v38 = vld [vmem:[#allocation8 + $0xa4] sm:$0xf0]  ;;  %v2948_v17 = vor.u32 %v3872_v9, %v2947_v8  ;;  %v2939_v21 = vld [vmem:[#allocation8 + $0x1a0] sm:$0xf]  ;;  %v3027_v26 = vld [vmem:[#allocation8 + $0x250] sm:$0xf] }
  0xa8   :  { %v2812_v48 = vor.u32 %v3838_v38, %v2811_v36  ;;  %v3870_v22 = vld [vmem:[#allocation8 + $0x1a4] sm:$0xf0]  ;;  %v3091_v28 = vld [vmem:[#allocation8 + $0x2d0] sm:$0xf]  ;;  %v3227_v7 = vld [vmem:[#allocation8 + $0x3e0] sm:$0xf] }
  0xa9   :  { %2713 = vmatmul.msk.bf16.vlgmr.msra.gmra.mxu2 %vm278_vm8, %v4362_v39  ;;  %2714 = vmatmul.msk.bf16.vlgmr.msra.gmra.mxu3 %vm278_vm8, %v4362_v39  ;;  %v2940_v29 = vor.u32 %v3870_v22, %v2939_v21  ;;  %v3890_v38 = vld [vmem:[#allocation8 + $0x244] sm:$0xf0]  ;;  %v3940_v21 = vld [vmem:[#allocation8 + $0x3d4] sm:$0xf0] }
  0xaa   :  { %2717 = vmatmul.msk.bf16.vlgmr.msra.gmra.mxu0 %vm278_vm8, %v4362_v39  ;;  %2718 = vmatmul.msk.bf16.vlgmr.msra.gmra.mxu1 %vm278_vm8, %v4362_v39  ;;  %v3926_v6 = vld [vmem:[#allocation8 + $0x364] sm:$0xf0] }
  0xab   :  { %416 = vmatpush.bf16.msra.mxu2 %v302_v40  ;;  %429 = vmatpush.bf16.msra.mxu3 %v305_v41  ;;  %v2972_v40 = vor.u32 %v3878_v32, %v2971_v31  ;;  %v2899_v41 = vld [vmem:[#allocation8 + $0x150] sm:$0xf]  ;;  %v3852_v32 = vld [vmem:[#allocation8 + $0x114] sm:$0xf0]  ;;  %v3942_v8 = vld [vmem:[#allocation8 + $0x3e4] sm:$0xf0] }
  0xac   :  { %494 = vmatpush.bf16.msra.mxu0 %v320_v42  ;;  %507 = vmatpush.bf16.msra.mxu1 %v323_v43  ;;  %v3860_v42 = vld [vmem:[#allocation8 + $0x154] sm:$0xf0]  ;;  %v2748_v43 = vor.u32 %v3822_v34, %v2747_v33  ;;  %v2867_v31 = vld [vmem:[#allocation8 + $0x110] sm:$0xf] }
  0xad   :  { %v2931_v33 = vld [vmem:[#allocation8 + $0x190] sm:$0xf]  ;;  %v3868_v34 = vld [vmem:[#allocation8 + $0x194] sm:$0xf0] }
  0xb9   :  { %2715 = vmatmul.msk.bf16.vlgmr.msrb.gmra.mxu2 %vm278_vm8, %v4362_v39  ;;  %2716 = vmatmul.msk.bf16.vlgmr.msrb.gmra.mxu3 %vm278_vm8, %v4362_v39 }
  0xba   :  { %2721 = vmatmul.msk.bf16.vlgmr.msrb.gmra.mxu0 %vm278_vm8, %v4362_v39  ;;  %2722 = vmatmul.msk.bf16.vlgmr.msrb.gmra.mxu1 %vm278_vm8, %v4362_v39 }
  0xbb   :  { %468 = vmatpush.bf16.msrb.mxu2 %v314_v49  ;;  %481 = vmatpush.bf16.msrb.mxu3 %v317_v50  ;;  %v2803_v49 = vld [vmem:[#allocation8 + $0x90] sm:$0xf]  ;;  %v2900_v50 = vor.u32 %v3860_v42, %v2899_v41  ;;  %v3906_v41 = vld [vmem:[#allocation8 + $0x2c4] sm:$0xf0]  ;;  %v2932_v42 = vor.u32 %v3868_v34, %v2931_v33 }
  0xbc   :  { %2097 = vmatpush.bf16.msrb.mxu0 %v2788_v61  ;;  %2110 = vmatpush.bf16.msrb.mxu1 %v2852_v1  ;;  %v2804_v60 = vor.u32 %v3836_v51, %v2803_v49  ;;  %v2795_v61 = vld [vmem:[#allocation8 + $0x80] sm:$0xf]  ;;  %v3043_v1 = vld [vmem:[#allocation8 + $0x270] sm:$0xf]  ;;  %v3944_v51 = vld [vmem:[#allocation8 + $0x3f4] sm:$0xf0] }
  0xbd   :  { %v3938_v33 = vld [vmem:[#allocation8 + $0x3c4] sm:$0xf0] }
  0xc0   :  { %2098 = vmatpush.bf16.msrb.mxu0 %v2780_v4  ;;  %2111 = vmatpush.bf16.msrb.mxu1 %v2844_v5  ;;  %v2732_v4 = vor.u32 %v3818_v59, %v2731_v58  ;;  %v3912_v5 = vld [vmem:[#allocation8 + $0x2f4] sm:$0xf0] }
  0xc1   :  { %v3108_v12 = vor.u32 %v3912_v5, %v3107_v3  ;;  %v3904_v58 = vld [vmem:[#allocation8 + $0x2b4] sm:$0xf0]  ;;  %v3902_v3 = vld [vmem:[#allocation8 + $0x2a4] sm:$0xf0] }
  0xc4   :  { %2099 = vmatpush.bf16.msrb.mxu0 %v2772_v10  ;;  %2112 = vmatpush.bf16.msrb.mxu1 %v2836_v11  ;;  %v2796_v10 = vor.u32 %v3834_v62, %v2795_v61  ;;  %v3044_v11 = vor.u32 %v3896_v2, %v3043_v1  ;;  %v3067_v2 = vld [vmem:[#allocation8 + $0x2a0] sm:$0xf] }
  0xc5   :  { %v3068_v5 = vor.u32 %v3902_v3, %v3067_v2  ;;  %v3363_v2 = vld [vmem:[#allocation8 + $0x4f0] sm:$0xf]  ;;  %v3976_v3 = vld [vmem:[#allocation8 + $0x4f4] sm:$0xf0] }
  0xc8   :  { %2100 = vmatpush.bf16.msrb.mxu0 %v2764_v18  ;;  %2113 = vmatpush.bf16.msrb.mxu1 %v2828_v23  ;;  %v3910_v18 = vld [vmem:[#allocation8 + $0x2e4] sm:$0xf0]  ;;  %v3036_v23 = vor.u32 %v3894_v15, %v3035_v14  ;;  %v3059_v14 = vld [vmem:[#allocation8 + $0x290] sm:$0xf]  ;;  %v3900_v15 = vld [vmem:[#allocation8 + $0x294] sm:$0xf0] }
  0xc9   :  { %2719 = vmatmul.msk.bf16.vlgmr.msra.gmra.mxu2 %vm278_vm8, %v4362_v39  ;;  %2720 = vmatmul.msk.bf16.vlgmr.msra.gmra.mxu3 %vm278_vm8, %v4362_v39  ;;  %v3100_v24 = vor.u32 %v3910_v18, %v3099_v16  ;;  %v3155_v16 = vld [vmem:[#allocation8 + $0x350] sm:$0xf]  ;;  %v3924_v18 = vld [vmem:[#allocation8 + $0x354] sm:$0xf0] }
  0xca   :  { %2725 = vmatmul.msk.bf16.vlgmr.msra.gmra.mxu0 %vm278_vm8, %v4362_v39  ;;  %2726 = vmatmul.msk.bf16.vlgmr.msra.gmra.mxu1 %vm278_vm8, %v4362_v39 }
  0xcb   :  { %520 = vmatpush.bf16.msra.mxu2 %v326_v56  ;;  %533 = vmatpush.bf16.msra.mxu3 %v329_v57  ;;  %v2955_v56 = vld [vmem:[#allocation8 + $0x1c0] sm:$0xf]  ;;  %v3874_v57 = vld [vmem:[#allocation8 + $0x1c4] sm:$0xf0] }
  0xcc   :  { %2101 = vmatpush.bf16.msrb.mxu0 %v2756_v30  ;;  %2114 = vmatpush.bf16.msrb.mxu1 %v2820_v35  ;;  %v2956_v0 = vor.u32 %v3874_v57, %v2955_v56  ;;  %v3908_v30 = vld [vmem:[#allocation8 + $0x2d4] sm:$0xf0]  ;;  %v3019_v35 = vld [vmem:[#allocation8 + $0x240] sm:$0xf]  ;;  %v2924_v56 = vor.u32 %v3866_v46, %v2923_v45  ;;  %v3075_v57 = vld [vmem:[#allocation8 + $0x2b0] sm:$0xf] }
  0xcd   :  { %v3092_v36 = vor.u32 %v3908_v30, %v3091_v28  ;;  %v3020_v49 = vor.u32 %v3890_v38, %v3019_v35  ;;  %v3076_v62 = vor.u32 %v3904_v58, %v3075_v57  ;;  %v3147_v28 = vld [vmem:[#allocation8 + $0x340] sm:$0xf]  ;;  %v3920_v35 = vld [vmem:[#allocation8 + $0x334] sm:$0xf0]  ;;  %v3934_v45 = vld [vmem:[#allocation8 + $0x3a4] sm:$0xf0] }
  0xce   :  { %v3936_v38 = vld [vmem:[#allocation8 + $0x3b4] sm:$0xf0]  ;;  %v3930_v57 = vld [vmem:[#allocation8 + $0x384] sm:$0xf0] }
  0xd0   :  { %2102 = vmatpush.bf16.msrb.mxu0 %v2748_v43  ;;  %2115 = vmatpush.bf16.msrb.mxu1 %v2812_v48  ;;  %v2859_v43 = vld [vmem:[#allocation8 + $0x100] sm:$0xf]  ;;  %v3928_v48 = vld [vmem:[#allocation8 + $0x374] sm:$0xf0] }
  0xd1   :  { %v2860_v53 = vor.u32 %v3850_v44, %v2859_v43  ;;  %v3172_v59 = vor.u32 %v3928_v48, %v3171_v47  ;;  %v3195_v44 = vld [vmem:[#allocation8 + $0x3a0] sm:$0xf]  ;;  %v3123_v47 = vld [vmem:[#allocation8 + $0x310] sm:$0xf]  ;;  %v3916_v48 = vld [vmem:[#allocation8 + $0x314] sm:$0xf0] }
  0xd2   :  { %v3196_v46 = vor.u32 %v3934_v45, %v3195_v44 }
  0xd4   :  { %2103 = vmatpush.bf16.msrb.mxu0 %v2740_v55  ;;  %2116 = vmatpush.bf16.msrb.mxu1 %v2804_v60  ;;  %v3888_v55 = vld [vmem:[#allocation8 + $0x234] sm:$0xf0] }
  0xd5   :  { %v3012_v61 = vor.u32 %v3888_v55, %v3011_v54  ;;  %v3914_v54 = vld [vmem:[#allocation8 + $0x304] sm:$0xf0]  ;;  %v3179_v55 = vld [vmem:[#allocation8 + $0x380] sm:$0xf] }
  0xd6   :  { %v3180_v58 = vor.u32 %v3930_v57, %v3179_v55 }
  0xd8   :  { %2104 = vmatpush.bf16.msrb.mxu0 %v2732_v4  ;;  %2117 = vmatpush.bf16.msrb.mxu1 %v2796_v10  ;;  %v3163_v4 = vld [vmem:[#allocation8 + $0x360] sm:$0xf]  ;;  %v3228_v10 = vor.u32 %v3942_v8, %v3227_v7 }
  0xd9   :  { %2723 = vmatmul.msk.bf16.vlgmr.msrb.gmra.mxu2 %vm278_vm8, %v4362_v39  ;;  %2724 = vmatmul.msk.bf16.vlgmr.msrb.gmra.mxu3 %vm278_vm8, %v4362_v39  ;;  %v3164_v9 = vor.u32 %v3926_v6, %v3163_v4 }
  0xda   :  { %2123 = vmatpush.bf16.msrb.mxu2 %v2916_v25  ;;  %2136 = vmatpush.bf16.msrb.mxu3 %v2980_v27  ;;  %v2876_v25 = vor.u32 %v3854_v20, %v2875_v19  ;;  %v3892_v27 = vld [vmem:[#allocation8 + $0x254] sm:$0xf0]  ;;  %v3219_v19 = vld [vmem:[#allocation8 + $0x3d0] sm:$0xf]  ;;  %v3156_v20 = vor.u32 %v3924_v18, %v3155_v16  ;;  %v3355_v16 = vld [vmem:[#allocation8 + $0x4e0] sm:$0xf] }
  0xdb   :  { %v3220_v22 = vor.u32 %v3940_v21, %v3219_v19  ;;  %v3956_v21 = vld [vmem:[#allocation8 + $0x454] sm:$0xf0] }
  0xdc   :  { %2149 = vmatpush.bf16.msra.mxu0 %v3044_v11  ;;  %2162 = vmatpush.bf16.msra.mxu1 %v3108_v12  ;;  %v2995_v11 = vld [vmem:[#allocation8 + $0x210] sm:$0xf]  ;;  %v3884_v12 = vld [vmem:[#allocation8 + $0x214] sm:$0xf0] }
  0xde   :  { %2124 = vmatpush.bf16.msrb.mxu2 %v2908_v37  ;;  %2137 = vmatpush.bf16.msrb.mxu3 %v2972_v40  ;;  %v2868_v37 = vor.u32 %v3852_v32, %v2867_v31  ;;  %v3083_v40 = vld [vmem:[#allocation8 + $0x2c0] sm:$0xf] }
  0xdf   :  { %v3211_v32 = vld [vmem:[#allocation8 + $0x3c0] sm:$0xf] }
  0xe0   :  { %2150 = vmatpush.bf16.msra.mxu0 %v3036_v23  ;;  %2163 = vmatpush.bf16.msra.mxu1 %v3100_v24  ;;  %v2987_v23 = vld [vmem:[#allocation8 + $0x200] sm:$0xf]  ;;  %v3882_v24 = vld [vmem:[#allocation8 + $0x204] sm:$0xf0]  ;;  %v3212_v34 = vor.u32 %v3938_v33, %v3211_v32 }
  0xe1   :  { %v3339_v32 = vld [vmem:[#allocation8 + $0x4c0] sm:$0xf]  ;;  %v3970_v33 = vld [vmem:[#allocation8 + $0x4c4] sm:$0xf0] }
  0xe2   :  { %2125 = vmatpush.bf16.msrb.mxu2 %v2900_v50  ;;  %2138 = vmatpush.bf16.msrb.mxu3 %v2964_v52  ;;  %v3235_v50 = vld [vmem:[#allocation8 + $0x3f0] sm:$0xf]  ;;  %v3084_v52 = vor.u32 %v3906_v41, %v3083_v40  ;;  %v3131_v41 = vld [vmem:[#allocation8 + $0x320] sm:$0xf] }
  0xe3   :  { %v3236_v60 = vor.u32 %v3944_v51, %v3235_v50  ;;  %v3187_v50 = vld [vmem:[#allocation8 + $0x390] sm:$0xf]  ;;  %v3932_v51 = vld [vmem:[#allocation8 + $0x394] sm:$0xf0] }
  0xe4   :  { %2164 = vmatpush.bf16.msra.mxu1 %v3092_v36  ;;  %v3203_v36 = vld [vmem:[#allocation8 + $0x3b0] sm:$0xf] }
  0xe5   :  { %v3204_v40 = vor.u32 %v3936_v38, %v3203_v36  ;;  %v3340_v38 = vor.u32 %v3970_v33, %v3339_v32  ;;  %v3243_v32 = vld [vmem:[#allocation8 + $0x400] sm:$0xf]  ;;  %v3946_v33 = vld [vmem:[#allocation8 + $0x404] sm:$0xf0] }
  0xe6   :  { %2126 = vmatpush.bf16.msrb.mxu2 %v2892_v63  ;;  %2139 = vmatpush.bf16.msrb.mxu3 %v2956_v0  ;;  %v3003_v63 = vld [vmem:[#allocation8 + $0x220] sm:$0xf]  ;;  %v3886_v0 = vld [vmem:[#allocation8 + $0x224] sm:$0xf0] }
  0xe7   :  { %v3004_v1 = vor.u32 %v3886_v0, %v3003_v63  ;;  %v3299_v0 = vld [vmem:[#allocation8 + $0x470] sm:$0xf] }
  0xe8   :  { %2165 = vmatpush.bf16.msra.mxu1 %v3084_v52  ;;  %v3188_v52 = vor.u32 %v3932_v51, %v3187_v50  ;;  %v3992_v51 = vld [vmem:[#allocation8 + $0x574] sm:$0xf0] }
  0xe9   :  { %2727 = vmatmul.msk.bf16.vlgmr.msra.gmra.mxu2 %vm278_vm8, %v4362_v39  ;;  %2728 = vmatmul.msk.bf16.vlgmr.msra.gmra.mxu3 %vm278_vm8, %v4362_v39  ;;  %v3028_v39 = vor.u32 %v3892_v27, %v3027_v26  ;;  %v2988_v26 = vor.u32 %v3882_v24, %v2987_v23  ;;  %v3898_v27 = vld [vmem:[#allocation8 + $0x284] sm:$0xf0]  ;;  %v3972_v23 = vld [vmem:[#allocation8 + $0x4d4] sm:$0xf0] }
  0xea   :  { %2127 = vmatpush.bf16.msrb.mxu2 %v2884_v13  ;;  %2140 = vmatpush.bf16.msrb.mxu3 %v2948_v17  ;;  %v2996_v13 = vor.u32 %v3884_v12, %v2995_v11  ;;  %v3060_v17 = vor.u32 %v3900_v15, %v3059_v14  ;;  %v3958_v15 = vld [vmem:[#allocation8 + $0x464] sm:$0xf0] }
  0xeb   :  { %2151 = vmatpush.bf16.msra.mxu0 %v3028_v39  ;;  %v3139_v39 = vld [vmem:[#allocation8 + $0x330] sm:$0xf] }
  0xec   :  { %2166 = vmatpush.bf16.msra.mxu1 %v3076_v62 }
  0xee   :  { %2128 = vmatpush.bf16.msrb.mxu2 %v2876_v25  ;;  %2141 = vmatpush.bf16.msrb.mxu3 %v2940_v29  ;;  %v3051_v25 = vld [vmem:[#allocation8 + $0x280] sm:$0xf]  ;;  %v3922_v29 = vld [vmem:[#allocation8 + $0x344] sm:$0xf0] }
  0xef   :  { %2152 = vmatpush.bf16.msra.mxu0 %v3020_v49  ;;  %v3052_v30 = vor.u32 %v3898_v27, %v3051_v25  ;;  %v3148_v31 = vor.u32 %v3922_v29, %v3147_v28  ;;  %v3124_v49 = vor.u32 %v3916_v48, %v3123_v47  ;;  %v3275_v28 = vld [vmem:[#allocation8 + $0x440] sm:$0xf]  ;;  %v3968_v47 = vld [vmem:[#allocation8 + $0x4b4] sm:$0xf0]  ;;  %v3427_v48 = vld [vmem:[#allocation8 + $0x570] sm:$0xf] }
  0xf0   :  { %2167 = vmatpush.bf16.msra.mxu1 %v3068_v5 }
  0xf2   :  { %2129 = vmatpush.bf16.msrb.mxu2 %v2868_v37  ;;  %2142 = vmatpush.bf16.msrb.mxu3 %v2932_v42  ;;  %v3140_v37 = vor.u32 %v3920_v35, %v3139_v39  ;;  %v3918_v42 = vld [vmem:[#allocation8 + $0x324] sm:$0xf0] }
  0xf3   :  { %2153 = vmatpush.bf16.msra.mxu0 %v3012_v61  ;;  %v3132_v43 = vor.u32 %v3918_v42, %v3131_v41  ;;  %v4404_v61 = vld [vmem:[#allocation7] sm:$0xff]  ;;  %v3952_v41 = vld [vmem:[#allocation8 + $0x434] sm:$0xf0] }
  0xf4   :  { %2168 = vmatpush.bf16.msra.mxu1 %v3060_v17  ;;  %v165_v62 = vperm.slane %v4404_v61, 0  ;;  %v166_v63 = vperm.slane %v4404_v61, 1  ;;  %v3974_v17 = vld [vmem:[#allocation8 + $0x4e4] sm:$0xf0]  ;;  %v170_v39 = vperm.slane %v4404_v61, 5  ;;  %v167_v35 = vperm.slane %v4404_v61, 2 }
  0xf5   :  { %v3356_v19 = vor.u32 %v3974_v17, %v3355_v16  ;;  %v168_v36 = vperm.slane %v4404_v61, 3  ;;  %v3251_v16 = vld [vmem:[#allocation8 + $0x410] sm:$0xf]  ;;  %v3948_v17 = vld [vmem:[#allocation8 + $0x414] sm:$0xf0] }
  0xf6   :  { %2130 = vmatpush.bf16.msrb.mxu2 %v2860_v53  ;;  %2143 = vmatpush.bf16.msrb.mxu3 %v2924_v56  ;;  %v3115_v53 = vld [vmem:[#allocation8 + $0x300] sm:$0xf] }
  0xf7   :  { %2154 = vmatpush.bf16.msra.mxu0 %v3004_v1  ;;  %v3116_v56 = vor.u32 %v3914_v54, %v3115_v53  ;;  %v3960_v1 = vld [vmem:[#allocation8 + $0x474] sm:$0xf0] }
  0xf8   :  { %2169 = vmatpush.bf16.msra.mxu1 %v3052_v30  ;;  %v3300_v8 = vor.u32 %v3960_v1, %v3299_v0  ;;  %v4008_v53 = vld [vmem:[#allocation8 + $0x5f4] sm:$0xf0] }
  0xf9   :  { %v4422_v54 = vld [vmem:[#allocation7 + $0x8] sm:$0xff] }
  0xfa   :  { %2175 = vmatpush.bf16.msra.mxu2 %v3172_v59  ;;  %2188 = vmatpush.bf16.msra.mxu3 %v3236_v60 }
  0xfb   :  { %2155 = vmatpush.bf16.msra.mxu0 %v2996_v13 }
  0xfe   :  { %2176 = vmatpush.bf16.msra.mxu2 %v3164_v9  ;;  %2189 = vmatpush.bf16.msra.mxu3 %v3228_v10  ;;  %v3364_v9 = vor.u32 %v3976_v3, %v3363_v2  ;;  %v3291_v10 = vld [vmem:[#allocation8 + $0x460] sm:$0xf]  ;;  %v3428_v2 = vor.u32 %v3992_v51, %v3427_v48  ;;  %v4040_v48 = vld [vmem:[#allocation8 + $0x6f4] sm:$0xf0] }
  0xff   :  { %2156 = vmatpush.bf16.msra.mxu0 %v2988_v26  ;;  %v3292_v18 = vor.u32 %v3958_v15, %v3291_v10  ;;  %v173_v10 = vperm.slane %v4422_v54, 0 }
 0x102   :  { %2177 = vmatpush.bf16.msra.mxu2 %v3156_v20  ;;  %2190 = vmatpush.bf16.msra.mxu3 %v3220_v22  ;;  %v3283_v20 = vld [vmem:[#allocation8 + $0x450] sm:$0xf] }
 0x103   :  { %v3347_v22 = vld [vmem:[#allocation8 + $0x4d0] sm:$0xf]  ;;  %v3284_v26 = vor.u32 %v3956_v21, %v3283_v20 }
 0x104   :  { %v3348_v27 = vor.u32 %v3972_v23, %v3347_v22  ;;  %v3315_v22 = vld [vmem:[#allocation8 + $0x490] sm:$0xf]  ;;  %v3964_v23 = vld [vmem:[#allocation8 + $0x494] sm:$0xf0] }
 0x106   :  { %2178 = vmatpush.bf16.msra.mxu2 %v3148_v31  ;;  %2191 = vmatpush.bf16.msra.mxu3 %v3212_v34  ;;  %v3954_v31 = vld [vmem:[#allocation8 + $0x444] sm:$0xf0]  ;;  %v169_v34 = vperm.slane %v4404_v61, 4 }
 0x10a   :  { %2179 = vmatpush.bf16.msra.mxu2 %v3140_v37  ;;  %2192 = vmatpush.bf16.msra.mxu3 %v3204_v40  ;;  %v3276_v37 = vor.u32 %v3954_v31, %v3275_v28  ;;  %v3267_v40 = vld [vmem:[#allocation8 + $0x430] sm:$0xf]  ;;  %v171_v28 = vperm.slane %v4404_v61, 6  ;;  %v172_v31 = vperm.slane %v4404_v61, 7  ;;  %v4002_v61 = vld [vmem:[#allocation8 + $0x5c4] sm:$0xf0] }
 0x10e   :  { %2180 = vmatpush.bf16.msra.mxu2 %v3132_v43  ;;  %2193 = vmatpush.bf16.msra.mxu3 %v3196_v46  ;;  %v3331_v46 = vld [vmem:[#allocation8 + $0x4b0] sm:$0xf] }
 0x112   :  { %2181 = vmatpush.bf16.msra.mxu2 %v3124_v49  ;;  %2194 = vmatpush.bf16.msra.mxu3 %v3188_v52  ;;  %v3491_v52 = vld [vmem:[#allocation8 + $0x5f0] sm:$0xf] }
 0x113   :  { %v3492_v3 = vor.u32 %v4008_v53, %v3491_v52 }
 0x116   :  { %2182 = vmatpush.bf16.msra.mxu2 %v3116_v56  ;;  %2195 = vmatpush.bf16.msra.mxu3 %v3180_v58 }
 0x127   :  { %v392_v59 = vpop.f32.mrf.mxu0  ;;  %v405_v60 = vpop.f32.mrf.mxu1 }
 0x128   :  { %v393_v42 = vadd.f32 %v392_v59, %v169_v34  ;;  %v406_v43 = vadd.f32 %v405_v60, %v170_v39  ;;  %v3268_v59 = vor.u32 %v3952_v41, %v3267_v40  ;;  %v3332_v60 = vor.u32 %v3968_v47, %v3331_v46  ;;  %v3307_v34 = vld [vmem:[#allocation8 + $0x480] sm:$0xf]  ;;  %v3986_v41 = vld [vmem:[#allocation8 + $0x544] sm:$0xf0]  ;;  %v4024_v46 = vld [vmem:[#allocation8 + $0x674] sm:$0xf0] }
 0x129   :  { %v3403_v40 = vld [vmem:[#allocation8 + $0x540] sm:$0xf]  ;;  %v3619_v47 = vld [vmem:[#allocation8 + $0x6f0] sm:$0xf] }
 0x12a   :  { %v4428_v0 = vpack.c.bf16 %v393_v42, %v393_v42  ;;  %v4430_v1 = vpack.c.bf16 %v406_v43, %v406_v43  ;;  %v3404_v51 = vor.u32 %v3986_v41, %v3403_v40  ;;  %v3443_v41 = vld [vmem:[#allocation8 + $0x590] sm:$0xf] }
 0x12c   :  { %v340_v4 = vpop.f32.mrf.mxu2  ;;  %v353_v5 = vpop.f32.mrf.mxu3 }
 0x12d   :  { %v341_v6 = vadd.f32 %v340_v4, %v165_v62  ;;  %v354_v7 = vadd.f32 %v353_v5, %v166_v63  ;;  %v3259_v62 = vld [vmem:[#allocation8 + $0x420] sm:$0xf]  ;;  %v3950_v63 = vld [vmem:[#allocation8 + $0x424] sm:$0xf0] }
 0x12e   :  { %v3323_v4 = vld [vmem:[#allocation8 + $0x4a0] sm:$0xf]  ;;  %v3966_v5 = vld [vmem:[#allocation8 + $0x4a4] sm:$0xf0] }
 0x12f   :  { %v4408_v11 = vpack.c.bf16 %v341_v6, %v341_v6  ;;  %v4410_v12 = vpack.c.bf16 %v354_v7, %v354_v7  ;;  %v394_v13 = vpop.f32.mrf.mxu0  ;;  %v407_v14 = vpop.f32.mrf.mxu1  ;;  %v3419_v6 = vld [vmem:[#allocation8 + $0x560] sm:$0xf]  ;;  %v3990_v7 = vld [vmem:[#allocation8 + $0x564] sm:$0xf0]  ;;  %v3324_v15 = vor.u32 %v3966_v5, %v3323_v4 }
 0x130   :  { %v174_v13 = vperm.slane %v4422_v54, 1  ;;  %v3260_v14 = vor.u32 %v3950_v63, %v3259_v62  ;;  %v3420_v20 = vor.u32 %v3990_v7, %v3419_v6  ;;  %v3984_v62 = vld [vmem:[#allocation8 + $0x534] sm:$0xf0]  ;;  %v3459_v63 = vld [vmem:[#allocation8 + $0x5b0] sm:$0xf] }
 0x131   :  { %2105 = vmatmul.bf16.vlgmr.msrb.gmra.mxu0 %v4408_v11  ;;  %2118 = vmatmul.bf16.vlgmr.msrb.gmra.mxu1 %v4410_v12  ;;  %v4000_v6 = vld [vmem:[#allocation8 + $0x5b4] sm:$0xf0]  ;;  %v3547_v7 = vld [vmem:[#allocation8 + $0x660] sm:$0xf] }
 0x132   :  { %2201 = vmatpush.bf16.msrb.mxu0 %v3300_v8  ;;  %2214 = vmatpush.bf16.msrb.mxu1 %v3364_v9  ;;  %v3483_v8 = vld [vmem:[#allocation8 + $0x5e0] sm:$0xf]  ;;  %v4006_v9 = vld [vmem:[#allocation8 + $0x5e4] sm:$0xf0] }
 0x133   :  { %v3484_v21 = vor.u32 %v4006_v9, %v3483_v8  ;;  %v4022_v8 = vld [vmem:[#allocation8 + $0x664] sm:$0xf0]  ;;  %v3611_v9 = vld [vmem:[#allocation8 + $0x6e0] sm:$0xf] }
 0x134   :  { %v342_v24 = vpop.f32.mrf.mxu2  ;;  %v355_v25 = vpop.f32.mrf.mxu3 }
 0x135   :  { %v3411_v24 = vld [vmem:[#allocation8 + $0x550] sm:$0xf]  ;;  %v3988_v25 = vld [vmem:[#allocation8 + $0x554] sm:$0xf0] }
 0x136   :  { %2202 = vmatpush.bf16.msrb.mxu0 %v3292_v18  ;;  %2215 = vmatpush.bf16.msrb.mxu1 %v3356_v19  ;;  %v3412_v42 = vor.u32 %v3988_v25, %v3411_v24  ;;  %v3998_v24 = vld [vmem:[#allocation8 + $0x5a4] sm:$0xf0]  ;;  %v3539_v25 = vld [vmem:[#allocation8 + $0x650] sm:$0xf] }
 0x137   :  { %v4414_v29 = vpop.f32.mrf.mxu0  ;;  %v4416_v30 = vpop.f32.mrf.mxu1 }
 0x13a   :  { %2203 = vmatpush.bf16.msrb.mxu0 %v3284_v26  ;;  %2216 = vmatpush.bf16.msrb.mxu1 %v3348_v27  ;;  %v3475_v26 = vld [vmem:[#allocation8 + $0x5d0] sm:$0xf]  ;;  %v4004_v27 = vld [vmem:[#allocation8 + $0x5d4] sm:$0xf0] }
 0x13b   :  { %v3476_v43 = vor.u32 %v4004_v27, %v3475_v26  ;;  %v4020_v26 = vld [vmem:[#allocation8 + $0x654] sm:$0xf0]  ;;  %v3603_v27 = vld [vmem:[#allocation8 + $0x6d0] sm:$0xf] }
 0x13c   :  { %v366_v44 = vpop.f32.mrf.mxu2  ;;  %v379_v45 = vpop.f32.mrf.mxu3 }
 0x13d   :  { %v367_v49 = vadd.f32 %v366_v44, %v167_v35  ;;  %v380_v50 = vadd.f32 %v379_v45, %v168_v36  ;;  %v3252_v36 = vor.u32 %v3948_v17, %v3251_v16  ;;  %v3467_v44 = vld [vmem:[#allocation8 + $0x5c0] sm:$0xf]  ;;  %v3555_v45 = vld [vmem:[#allocation8 + $0x670] sm:$0xf] }
 0x13e   :  { %2204 = vmatpush.bf16.msrb.mxu0 %v3276_v37  ;;  %2217 = vmatpush.bf16.msrb.mxu1 %v3340_v38  ;;  %v3316_v37 = vor.u32 %v3964_v23, %v3315_v22  ;;  %v3962_v38 = vld [vmem:[#allocation8 + $0x484] sm:$0xf0]  ;;  %v3451_v23 = vld [vmem:[#allocation8 + $0x5a0] sm:$0xf] }
 0x13f   :  { %v4424_v55 = vpack.c.bf16 %v367_v49, %v367_v49  ;;  %v4426_v56 = vpack.c.bf16 %v380_v50, %v380_v50  ;;  %v446_v57 = vpop.f32.mrf.mxu0  ;;  %v459_v58 = vpop.f32.mrf.mxu1  ;;  %v3244_v49 = vor.u32 %v3946_v33, %v3243_v32  ;;  %v3308_v50 = vor.u32 %v3962_v38, %v3307_v34 }
 0x140   :  { %v3468_v57 = vor.u32 %v4002_v61, %v3467_v44  ;;  %v3556_v58 = vor.u32 %v4024_v46, %v3555_v45  ;;  %v3452_v34 = vor.u32 %v3998_v24, %v3451_v23  ;;  %v3540_v38 = vor.u32 %v4020_v26, %v3539_v25  ;;  %v4018_v44 = vld [vmem:[#allocation8 + $0x644] sm:$0xf0]  ;;  %v3595_v61 = vld [vmem:[#allocation8 + $0x6c0] sm:$0xf] }
 0x141   :  { %2131 = vmatmul.bf16.vlgmr.msrb.gmra.mxu2 %v4424_v55  ;;  %2144 = vmatmul.bf16.vlgmr.msrb.gmra.mxu3 %v4426_v56  ;;  %v4034_v45 = vld [vmem:[#allocation8 + $0x6c4] sm:$0xf0]  ;;  %v3371_v46 = vld [vmem:[#allocation8 + $0x500] sm:$0xf] }
 0x142   :  { %2157 = vmatmul.bf16.vlgmr.msra.gmra.mxu0 %v4428_v0  ;;  %2170 = vmatmul.bf16.vlgmr.msra.gmra.mxu1 %v4430_v1  ;;  %v4030_v23 = vld [vmem:[#allocation8 + $0x6a4] sm:$0xf0]  ;;  %v3675_v24 = vld [vmem:[#allocation8 + $0x760] sm:$0xf] }
 0x143   :  { %2205 = vmatpush.bf16.msrb.mxu0 %v3268_v59  ;;  %2218 = vmatpush.bf16.msrb.mxu1 %v3332_v60  ;;  %v3620_v59 = vor.u32 %v4040_v48, %v3619_v47  ;;  %v3395_v60 = vld [vmem:[#allocation8 + $0x530] sm:$0xf] }
 0x144   :  { %2227 = vmatpush.bf16.msrb.mxu2 %v3428_v2  ;;  %2240 = vmatpush.bf16.msrb.mxu3 %v3492_v3  ;;  %v368_v18 = vpop.f32.mrf.mxu2  ;;  %v381_v19 = vpop.f32.mrf.mxu3  ;;  %v445_v2 = vadd.f32 %v4414_v29, %v173_v10  ;;  %v458_v3 = vadd.f32 %v4416_v30, %v174_v13  ;;  %v3396_v29 = vor.u32 %v3984_v62, %v3395_v60  ;;  %v3387_v13 = vld [vmem:[#allocation8 + $0x520] sm:$0xf]  ;;  %v4016_v60 = vld [vmem:[#allocation8 + $0x634] sm:$0xf0]  ;;  %v3587_v62 = vld [vmem:[#allocation8 + $0x6b0] sm:$0xf] }
 0x145   :  { %v3460_v10 = vor.u32 %v4000_v6, %v3459_v63  ;;  %v3548_v30 = vor.u32 %v4022_v8, %v3547_v7  ;;  %v3982_v19 = vld [vmem:[#allocation8 + $0x524] sm:$0xf0]  ;;  %v4032_v63 = vld [vmem:[#allocation8 + $0x6b4] sm:$0xf0] }
 0x146   :  { %v3388_v33 = vor.u32 %v3982_v19, %v3387_v13 }
 0x147   :  { %2206 = vmatpush.bf16.msrb.mxu0 %v3260_v14  ;;  %2219 = vmatpush.bf16.msrb.mxu1 %v3324_v15  ;;  %v4440_v39 = vpop.f32.mrf.mxu0  ;;  %v4442_v35 = vpop.f32.mrf.mxu1  ;;  %v4038_v14 = vld [vmem:[#allocation8 + $0x6e4] sm:$0xf0] }
 0x148   :  { %2228 = vmatpush.bf16.msrb.mxu2 %v3420_v20  ;;  %2241 = vmatpush.bf16.msrb.mxu3 %v3484_v21  ;;  %v4450_v20 = vpack.c.bf16 %v445_v2, %v445_v2  ;;  %v4452_v21 = vpack.c.bf16 %v458_v3, %v458_v3  ;;  %v3612_v22 = vor.u32 %v4038_v14, %v3611_v9  ;;  %v3683_v2 = vld [vmem:[#allocation8 + $0x770] sm:$0xf]  ;;  %v4056_v3 = vld [vmem:[#allocation8 + $0x774] sm:$0xf0] }
 0x149   :  { %v3684_v13 = vor.u32 %v4056_v3, %v3683_v2  ;;  %v4066_v2 = vld [vmem:[#allocation8 + $0x7c4] sm:$0xf0]  ;;  %v3831_v3 = vld [vmem:[#allocation8 + $0x74] sm:$0xf] }
 0x14b   :  { %2207 = vmatpush.bf16.msrb.mxu0 %v3252_v36  ;;  %2220 = vmatpush.bf16.msrb.mxu1 %v3316_v37  ;;  %v3379_v36 = vld [vmem:[#allocation8 + $0x510] sm:$0xf]  ;;  %v3980_v37 = vld [vmem:[#allocation8 + $0x514] sm:$0xf0] }
 0x14c   :  { %2229 = vmatpush.bf16.msrb.mxu2 %v3412_v42  ;;  %2242 = vmatpush.bf16.msrb.mxu3 %v3476_v43  ;;  %v418_v52 = vpop.f32.mrf.mxu2  ;;  %v431_v53 = vpop.f32.mrf.mxu3  ;;  %v3996_v42 = vld [vmem:[#allocation8 + $0x594] sm:$0xf0]  ;;  %v3531_v43 = vld [vmem:[#allocation8 + $0x640] sm:$0xf]  ;;  %v3380_v47 = vor.u32 %v3980_v37, %v3379_v36 }
 0x14d   :  { %v419_v4 = vadd.f32 %v418_v52, %v171_v28  ;;  %v432_v5 = vadd.f32 %v431_v53, %v172_v31  ;;  %v4036_v28 = vld [vmem:[#allocation8 + $0x6d4] sm:$0xf0]  ;;  %v3444_v48 = vor.u32 %v3996_v42, %v3443_v41  ;;  %v3435_v52 = vld [vmem:[#allocation8 + $0x580] sm:$0xf]  ;;  %v3532_v53 = vor.u32 %v4018_v44, %v3531_v43  ;;  %v3667_v42 = vld [vmem:[#allocation8 + $0x750] sm:$0xf] }
 0x14e   :  { %v3604_v40 = vor.u32 %v4036_v28, %v3603_v27  ;;  %v4054_v27 = vld [vmem:[#allocation8 + $0x764] sm:$0xf0]  ;;  %v3739_v28 = vld [vmem:[#allocation8 + $0x7e0] sm:$0xf]  ;;  %v4012_v36 = vld [vmem:[#allocation8 + $0x614] sm:$0xf0] }
 0x14f   :  { %v4446_v15 = vpack.c.bf16 %v419_v4, %v419_v4  ;;  %v4448_v16 = vpack.c.bf16 %v432_v5, %v432_v5  ;;  %2208 = vmatpush.bf16.msrb.mxu0 %v3244_v49  ;;  %2221 = vmatpush.bf16.msrb.mxu1 %v3308_v50  ;;  %v498_v17 = vpop.f32.mrf.mxu0  ;;  %v511_v18 = vpop.f32.mrf.mxu1  ;;  %v175_v49 = vperm.slane %v4422_v54, 2  ;;  %v176_v50 = vperm.slane %v4422_v54, 3  ;;  %v3747_v4 = vld [vmem:[#allocation8 + $0x7f0] sm:$0xf]  ;;  %v4072_v5 = vld [vmem:[#allocation8 + $0x7f4] sm:$0xf0] }
 0x150   :  { %2230 = vmatpush.bf16.msrb.mxu2 %v3404_v51  ;;  %2243 = vmatpush.bf16.msrb.mxu3 %v3468_v57  ;;  %v3978_v51 = vld [vmem:[#allocation8 + $0x504] sm:$0xf0]  ;;  %v3596_v57 = vor.u32 %v4034_v45, %v3595_v61  ;;  %v3748_v19 = vor.u32 %v4072_v5, %v3747_v4  ;;  %v3676_v37 = vor.u32 %v4054_v27, %v3675_v24  ;;  %v4028_v41 = vld [vmem:[#allocation8 + $0x694] sm:$0xf0]  ;;  %v3731_v44 = vld [vmem:[#allocation8 + $0x7d0] sm:$0xf] }
 0x151   :  { %2183 = vmatmul.bf16.vlgmr.msra.gmra.mxu2 %v4446_v15  ;;  %2196 = vmatmul.bf16.vlgmr.msra.gmra.mxu3 %v4448_v16  ;;  %v3372_v8 = vor.u32 %v3978_v51, %v3371_v46  ;;  %v4052_v43 = vld [vmem:[#allocation8 + $0x754] sm:$0xf0]  ;;  %v177_v45 = vperm.slane %v4422_v54, 4  ;;  %v178_v46 = vperm.slane %v4422_v54, 5  ;;  %v3499_v51 = vld [vmem:[#allocation8 + $0x600] sm:$0xf] }
 0x152   :  { %2209 = vmatmul.bf16.vlgmr.msrb.gmra.mxu0 %v4450_v20  ;;  %2222 = vmatmul.bf16.vlgmr.msrb.gmra.mxu1 %v4452_v21  ;;  %v4068_v61 = vld [vmem:[#allocation8 + $0x7d4] sm:$0xf0]  ;;  %v2789_v4 = vld [vmem:[#allocation8 + $0x78] sm:$0xf0]  ;;  %v3847_v5 = vld [vmem:[#allocation8 + $0xf4] sm:$0xf] }
 0x153   :  { %2253 = vmatpush.bf16.msra.mxu0 %v3556_v58  ;;  %2266 = vmatpush.bf16.msra.mxu1 %v3620_v59  ;;  %v3994_v58 = vld [vmem:[#allocation8 + $0x584] sm:$0xf0]  ;;  %v3523_v59 = vld [vmem:[#allocation8 + $0x630] sm:$0xf]  ;;  %v2781_v27 = vld [vmem:[#allocation8 + $0x68] sm:$0xf0] }
 0x154   :  { %2231 = vmatpush.bf16.msrb.mxu2 %v3396_v29  ;;  %2244 = vmatpush.bf16.msrb.mxu3 %v3460_v10  ;;  %v420_v31 = vpop.f32.mrf.mxu2  ;;  %v433_v32 = vpop.f32.mrf.mxu3  ;;  %v3436_v9 = vor.u32 %v3994_v58, %v3435_v52  ;;  %v3524_v14 = vor.u32 %v4016_v60, %v3523_v59  ;;  %v3588_v29 = vor.u32 %v4032_v63, %v3587_v62  ;;  %v3515_v10 = vld [vmem:[#allocation8 + $0x620] sm:$0xf]  ;;  %v4010_v52 = vld [vmem:[#allocation8 + $0x604] sm:$0xf0] }
 0x155   :  { %v4070_v31 = vld [vmem:[#allocation8 + $0x7e4] sm:$0xf0]  ;;  %v3732_v58 = vor.u32 %v4068_v61, %v3731_v44  ;;  %v3659_v60 = vld [vmem:[#allocation8 + $0x740] sm:$0xf]  ;;  %v2773_v44 = vld [vmem:[#allocation8 + $0x58] sm:$0xf0] }
 0x156   :  { %v4026_v59 = vld [vmem:[#allocation8 + $0x684] sm:$0xf0]  ;;  %v3723_v63 = vld [vmem:[#allocation8 + $0x7c0] sm:$0xf]  ;;  %v3843_v61 = vld [vmem:[#allocation8 + $0xd4] sm:$0xf] }
 0x157   :  { %2254 = vmatpush.bf16.msra.mxu0 %v3548_v30  ;;  %2267 = vmatpush.bf16.msra.mxu1 %v3612_v22  ;;  %v4014_v30 = vld [vmem:[#allocation8 + $0x624] sm:$0xf0]  ;;  %v3579_v22 = vld [vmem:[#allocation8 + $0x6a0] sm:$0xf] }
 0x158   :  { %2232 = vmatpush.bf16.msrb.mxu2 %v3388_v33  ;;  %2245 = vmatpush.bf16.msrb.mxu3 %v3452_v34  ;;  %v3516_v32 = vor.u32 %v4014_v30, %v3515_v10  ;;  %v3580_v33 = vor.u32 %v4030_v23, %v3579_v22  ;;  %v3507_v34 = vld [vmem:[#allocation8 + $0x610] sm:$0xf]  ;;  %v4050_v62 = vld [vmem:[#allocation8 + $0x744] sm:$0xf0]  ;;  %v4048_v10 = vld [vmem:[#allocation8 + $0x734] sm:$0xf0]  ;;  %v2792_v30 = vor.u32 %v3831_v3, %v2789_v4 }
 0x159   :  { %v4064_v22 = vld [vmem:[#allocation8 + $0x7b4] sm:$0xf0]  ;;  %v3829_v23 = vld [vmem:[#allocation8 + $0x64] sm:$0xf]  ;;  %v180_v3 = vperm.slane %v4422_v54, 7 }
 0x15b   :  { %2255 = vmatpush.bf16.msra.mxu0 %v3540_v38  ;;  %2268 = vmatpush.bf16.msra.mxu1 %v3604_v40  ;;  %v3740_v38 = vor.u32 %v4070_v31, %v3739_v28  ;;  %v3571_v40 = vld [vmem:[#allocation8 + $0x690] sm:$0xf]  ;;  %v3845_v28 = vld [vmem:[#allocation8 + $0xe4] sm:$0xf]  ;;  %v2845_v31 = vld [vmem:[#allocation8 + $0xe8] sm:$0xf0] }
 0x15c   :  { %2233 = vmatpush.bf16.msrb.mxu2 %v3380_v47  ;;  %2246 = vmatpush.bf16.msrb.mxu3 %v3444_v48  ;;  %v470_v6 = vpop.f32.mrf.mxu2  ;;  %v483_v7 = vpop.f32.mrf.mxu3 }
 0x15d   :  { %v471_v17 = vadd.f32 %v470_v6, %v175_v49  ;;  %v484_v18 = vadd.f32 %v483_v7, %v176_v50  ;;  %v3508_v49 = vor.u32 %v4012_v36, %v3507_v34  ;;  %v3572_v50 = vor.u32 %v4028_v41, %v3571_v40  ;;  %v2853_v6 = vld [vmem:[#allocation8 + $0xf8] sm:$0xf0]  ;;  %v3643_v36 = vld [vmem:[#allocation8 + $0x720] sm:$0xf] }
 0x15e   :  { %v497_v7 = vadd.f32 %v4440_v39, %v177_v45  ;;  %v2848_v40 = vor.u32 %v3845_v28, %v2845_v31  ;;  %v3707_v41 = vld [vmem:[#allocation8 + $0x7a0] sm:$0xf]  ;;  %v2837_v45 = vld [vmem:[#allocation8 + $0xd8] sm:$0xf0] }
 0x15f   :  { %2256 = vmatpush.bf16.msra.mxu0 %v3532_v53  ;;  %2269 = vmatpush.bf16.msra.mxu1 %v3596_v57  ;;  %v4460_v25 = vpack.c.bf16 %v471_v17, %v471_v17  ;;  %v4462_v26 = vpack.c.bf16 %v484_v18, %v484_v18  ;;  %v3563_v53 = vld [vmem:[#allocation8 + $0x680] sm:$0xf]  ;;  %v3668_v57 = vor.u32 %v4052_v43, %v3667_v42  ;;  %v4062_v42 = vld [vmem:[#allocation8 + $0x7a4] sm:$0xf0]  ;;  %v3827_v43 = vld [vmem:[#allocation8 + $0x54] sm:$0xf] }
 0x160   :  { %2234 = vmatpush.bf16.msrb.mxu2 %v3372_v8  ;;  %2247 = vmatpush.bf16.msrb.mxu3 %v3436_v9  ;;  %v3500_v8 = vor.u32 %v4010_v52, %v3499_v51  ;;  %v3564_v9 = vor.u32 %v4026_v59, %v3563_v53  ;;  %v3660_v17 = vor.u32 %v4050_v62, %v3659_v60  ;;  %v3699_v52 = vld [vmem:[#allocation8 + $0x790] sm:$0xf]  ;;  %v4060_v53 = vld [vmem:[#allocation8 + $0x794] sm:$0xf0]  ;;  %v2765_v60 = vld [vmem:[#allocation8 + $0x48] sm:$0xf0] }
 0x161   :  { %v3724_v18 = vor.u32 %v4066_v2, %v3723_v63  ;;  %v2840_v51 = vor.u32 %v3843_v61, %v2837_v45  ;;  %v3841_v62 = vld [vmem:[#allocation8 + $0xc4] sm:$0xf]  ;;  %v2829_v63 = vld [vmem:[#allocation8 + $0xc8] sm:$0xf0]  ;;  %v179_v2 = vperm.slane %v4422_v54, 6 }
 0x162   :  { %v2981_v54 = vld [vmem:[#allocation8 + $0x1f8] sm:$0xf0]  ;;  %v3877_v61 = vld [vmem:[#allocation8 + $0x1e4] sm:$0xf]  ;;  %v2973_v45 = vld [vmem:[#allocation8 + $0x1e8] sm:$0xf0] }
 0x163   :  { %2257 = vmatpush.bf16.msra.mxu0 %v3524_v14  ;;  %2270 = vmatpush.bf16.msra.mxu1 %v3588_v29  ;;  %v510_v14 = vadd.f32 %v4442_v35, %v178_v46  ;;  %v3651_v29 = vld [vmem:[#allocation8 + $0x730] sm:$0xf] }
 0x164   :  { %2279 = vmatpush.bf16.msra.mxu2 %v3684_v13  ;;  %2292 = vmatpush.bf16.msra.mxu3 %v3748_v19  ;;  %v472_v47 = vpop.f32.mrf.mxu2  ;;  %v485_v48 = vpop.f32.mrf.mxu3  ;;  %v2856_v13 = vor.u32 %v3847_v5, %v2853_v6  ;;  %v3715_v19 = vld [vmem:[#allocation8 + $0x7b0] sm:$0xf]  ;;  %v3700_v5 = vor.u32 %v4060_v53, %v3699_v52  ;;  %v3627_v6 = vld [vmem:[#allocation8 + $0x700] sm:$0xf]  ;;  %v3835_v52 = vld [vmem:[#allocation8 + $0x94] sm:$0xf] }
 0x165   :  { %2235 = vmatmul.bf16.vlgmr.msrb.gmra.mxu2 %v4460_v25  ;;  %2248 = vmatmul.bf16.vlgmr.msrb.gmra.mxu3 %v4462_v26  ;;  %v4476_v35 = vpack.c.bf16 %v510_v14, %v510_v14  ;;  %v3716_v34 = vor.u32 %v4064_v22, %v3715_v19  ;;  %v3708_v47 = vor.u32 %v4062_v42, %v3707_v41  ;;  %v3635_v48 = vld [vmem:[#allocation8 + $0x710] sm:$0xf]  ;;  %v2917_v19 = vld [vmem:[#allocation8 + $0x178] sm:$0xf0]  ;;  %v3879_v22 = vld [vmem:[#allocation8 + $0x1f4] sm:$0xf] }
 0x166   :  { %v2832_v14 = vor.u32 %v3841_v62, %v2829_v63  ;;  %v3837_v41 = vld [vmem:[#allocation8 + $0xa4] sm:$0xf]  ;;  %v2813_v42 = vld [vmem:[#allocation8 + $0xa8] sm:$0xf0]  ;;  %v2805_v53 = vld [vmem:[#allocation8 + $0x98] sm:$0xf0] }
 0x167   :  { %2258 = vmatpush.bf16.msra.mxu0 %v3516_v32  ;;  %2271 = vmatpush.bf16.msra.mxu1 %v3580_v33  ;;  %v4474_v32 = vpack.c.bf16 %v497_v7, %v497_v7  ;;  %v3652_v33 = vor.u32 %v4048_v10, %v3651_v29  ;;  %v4042_v7 = vld [vmem:[#allocation8 + $0x704] sm:$0xf0]  ;;  %v2757_v29 = vld [vmem:[#allocation8 + $0x38] sm:$0xf0]  ;;  %v3839_v10 = vld [vmem:[#allocation8 + $0xb4] sm:$0xf]  ;;  %v2808_v63 = vor.u32 %v3835_v52, %v2805_v53 }
 0x168   :  { %2280 = vmatpush.bf16.msra.mxu2 %v3676_v37  ;;  %2293 = vmatpush.bf16.msra.mxu3 %v3740_v38  ;;  %v4046_v37 = vld [vmem:[#allocation8 + $0x724] sm:$0xf0]  ;;  %v2784_v38 = vor.u32 %v3829_v23, %v2781_v27  ;;  %v3628_v23 = vor.u32 %v4042_v7, %v3627_v6  ;;  %v2797_v7 = vld [vmem:[#allocation8 + $0x88] sm:$0xf0] }
 0x169   :  { %v3644_v46 = vor.u32 %v4046_v37, %v3643_v36  ;;  %v3821_v36 = vld [vmem:[#allocation8 + $0x24] sm:$0xf]  ;;  %v2749_v37 = vld [vmem:[#allocation8 + $0x28] sm:$0xf0] }
 0x16b   :  { %2259 = vmatpush.bf16.msra.mxu0 %v3508_v49  ;;  %2272 = vmatpush.bf16.msra.mxu1 %v3572_v50  ;;  %v4044_v49 = vld [vmem:[#allocation8 + $0x714] sm:$0xf0]  ;;  %v2776_v50 = vor.u32 %v3827_v43, %v2773_v44  ;;  %v3861_v43 = vld [vmem:[#allocation8 + $0x164] sm:$0xf]  ;;  %v2909_v44 = vld [vmem:[#allocation8 + $0x168] sm:$0xf0] }
 0x16c   :  { %2281 = vmatpush.bf16.msra.mxu2 %v3668_v57  ;;  %2294 = vmatpush.bf16.msra.mxu3 %v3732_v58  ;;  %v4470_v24 = vpop.f32.mrf.mxu2  ;;  %v4472_v39 = vpop.f32.mrf.mxu3  ;;  %v3825_v57 = vld [vmem:[#allocation8 + $0x44] sm:$0xf]  ;;  %v3636_v4 = vor.u32 %v4044_v49, %v3635_v48  ;;  %v3819_v48 = vld [vmem:[#allocation8 + $0x14] sm:$0xf]  ;;  %v2741_v49 = vld [vmem:[#allocation8 + $0x18] sm:$0xf0] }
 0x16d   :  { %v523_v31 = vadd.f32 %v4470_v24, %v179_v2  ;;  %v2744_v62 = vor.u32 %v3819_v48, %v2741_v49  ;;  %v3817_v2 = vld [vmem:[#allocation8 + $0x4] sm:$0xf]  ;;  %v3891_v48 = vld [vmem:[#allocation8 + $0x254] sm:$0xf]  ;;  %v3029_v49 = vld [vmem:[#allocation8 + $0x258] sm:$0xf0] }
 0x16f   :  { %2260 = vmatpush.bf16.msra.mxu0 %v3500_v8  ;;  %2273 = vmatpush.bf16.msra.mxu1 %v3564_v9  ;;  %v3691_v8 = vld [vmem:[#allocation8 + $0x780] sm:$0xf]  ;;  %v2768_v9 = vor.u32 %v3825_v57, %v2765_v60  ;;  %v3859_v57 = vld [vmem:[#allocation8 + $0x154] sm:$0xf]  ;;  %v2965_v60 = vld [vmem:[#allocation8 + $0x1d8] sm:$0xf0] }
 0x170   :  { %2282 = vmatpush.bf16.msra.mxu2 %v3660_v17  ;;  %2295 = vmatpush.bf16.msra.mxu3 %v3724_v18  ;;  %v4058_v17 = vld [vmem:[#allocation8 + $0x784] sm:$0xf0]  ;;  %v3823_v18 = vld [vmem:[#allocation8 + $0x34] sm:$0xf] }
 0x171   :  { %v3692_v27 = vor.u32 %v4058_v17, %v3691_v8  ;;  %v2760_v28 = vor.u32 %v3823_v18, %v2757_v29  ;;  %v3857_v8 = vld [vmem:[#allocation8 + $0x144] sm:$0xf]  ;;  %v2957_v17 = vld [vmem:[#allocation8 + $0x1c8] sm:$0xf0]  ;;  %v3895_v18 = vld [vmem:[#allocation8 + $0x274] sm:$0xf] }
 0x172   :  { %2261 = vmatmul.bf16.vlgmr.msra.gmra.mxu0 %v4474_v32  ;;  %2274 = vmatmul.bf16.vlgmr.msra.gmra.mxu1 %v4476_v35  ;;  %v3045_v29 = vld [vmem:[#allocation8 + $0x278] sm:$0xf0] }
 0x173   :  { %2305 = vmatpush.bf16.msrb.mxu0 %v2792_v30  ;;  %2318 = vmatpush.bf16.msrb.mxu1 %v2856_v13  ;;  %v2821_v30 = vld [vmem:[#allocation8 + $0xb8] sm:$0xf0]  ;;  %v3863_v13 = vld [vmem:[#allocation8 + $0x174] sm:$0xf] }
 0x174   :  { %2283 = vmatpush.bf16.msra.mxu2 %v3652_v33  ;;  %2296 = vmatpush.bf16.msra.mxu3 %v3716_v34  ;;  %v524_v58 = vpop.f32.mrf.mxu2  ;;  %v537_v59 = vpop.f32.mrf.mxu3  ;;  %v536_v33 = vadd.f32 %v4472_v39, %v180_v3  ;;  %v2824_v34 = vor.u32 %v3839_v10, %v2821_v30  ;;  %v2816_v39 = vor.u32 %v3837_v41, %v2813_v42  ;;  %v2733_v3 = vld [vmem:[#allocation8 + $0x8] sm:$0xf0]  ;;  %v3911_v10 = vld [vmem:[#allocation8 + $0x2f4] sm:$0xf]  ;;  %v3109_v30 = vld [vmem:[#allocation8 + $0x2f8] sm:$0xf0] }
 0x175   :  { %v2901_v58 = vld [vmem:[#allocation8 + $0x158] sm:$0xf0]  ;;  %v3875_v59 = vld [vmem:[#allocation8 + $0x1d4] sm:$0xf] }
 0x176   :  { %v4486_v24 = vpack.c.bf16 %v536_v33, %v536_v33  ;;  %v2968_v6 = vor.u32 %v3875_v59, %v2965_v60  ;;  %v3871_v33 = vld [vmem:[#allocation8 + $0x1b4] sm:$0xf]  ;;  %v3032_v59 = vor.u32 %v3891_v48, %v3029_v49 }
 0x177   :  { %2306 = vmatpush.bf16.msrb.mxu0 %v2784_v38  ;;  %2319 = vmatpush.bf16.msrb.mxu1 %v2848_v40  ;;  %v2920_v38 = vor.u32 %v3863_v13, %v2917_v19  ;;  %v2984_v40 = vor.u32 %v3879_v22, %v2981_v54  ;;  %v2736_v13 = vor.u32 %v3817_v2, %v2733_v3  ;;  %v3889_v2 = vld [vmem:[#allocation8 + $0x244] sm:$0xf]  ;;  %v3021_v3 = vld [vmem:[#allocation8 + $0x248] sm:$0xf0] }
 0x178   :  { %2284 = vmatpush.bf16.msra.mxu2 %v3644_v46  ;;  %2297 = vmatpush.bf16.msra.mxu3 %v3708_v47  ;;  %v2752_v46 = vor.u32 %v3821_v36, %v2749_v37  ;;  %v4484_v47 = vpack.c.bf16 %v523_v31, %v523_v31  ;;  %v3112_v31 = vor.u32 %v3911_v10, %v3109_v30  ;;  %v3893_v36 = vld [vmem:[#allocation8 + $0x264] sm:$0xf]  ;;  %v3037_v37 = vld [vmem:[#allocation8 + $0x268] sm:$0xf0]  ;;  %v3903_v10 = vld [vmem:[#allocation8 + $0x2b4] sm:$0xf] }
 0x179   :  { %v3077_v30 = vld [vmem:[#allocation8 + $0x2b8] sm:$0xf0] }
 0x17b   :  { %2307 = vmatpush.bf16.msrb.mxu0 %v2776_v50  ;;  %2320 = vmatpush.bf16.msrb.mxu1 %v2840_v51  ;;  %v2912_v50 = vor.u32 %v3861_v43, %v2909_v44  ;;  %v2976_v51 = vor.u32 %v3877_v61, %v2973_v45  ;;  %v3853_v43 = vld [vmem:[#allocation8 + $0x124] sm:$0xf]  ;;  %v2877_v44 = vld [vmem:[#allocation8 + $0x128] sm:$0xf0]  ;;  %v3040_v61 = vor.u32 %v3893_v36, %v3037_v37 }
 0x17c   :  { %2285 = vmatpush.bf16.msra.mxu2 %v3636_v4  ;;  %2298 = vmatpush.bf16.msra.mxu3 %v3700_v5  ;;  %v3833_v4 = vld [vmem:[#allocation8 + $0x84] sm:$0xf]  ;;  %v2904_v5 = vor.u32 %v3859_v57, %v2901_v58  ;;  %v2880_v52 = vor.u32 %v3853_v43, %v2877_v44  ;;  %v3851_v57 = vld [vmem:[#allocation8 + $0x114] sm:$0xf]  ;;  %v2869_v58 = vld [vmem:[#allocation8 + $0x118] sm:$0xf0] }
 0x17d   :  { %v2800_v19 = vor.u32 %v3833_v4, %v2797_v7  ;;  %v3085_v4 = vld [vmem:[#allocation8 + $0x2c8] sm:$0xf0]  ;;  %v3941_v43 = vld [vmem:[#allocation8 + $0x3e4] sm:$0xf] }
 0x17e   :  { %v2861_v7 = vld [vmem:[#allocation8 + $0x108] sm:$0xf0] }
 0x17f   :  { %2308 = vmatpush.bf16.msrb.mxu0 %v2768_v9  ;;  %2321 = vmatpush.bf16.msrb.mxu1 %v2832_v14  ;;  %v2893_v9 = vld [vmem:[#allocation8 + $0x148] sm:$0xf0]  ;;  %v3873_v14 = vld [vmem:[#allocation8 + $0x1c4] sm:$0xf] }
 0x180   :  { %2286 = vmatpush.bf16.msra.mxu2 %v3628_v23  ;;  %2299 = vmatpush.bf16.msra.mxu3 %v3692_v27  ;;  %v2896_v22 = vor.u32 %v3857_v8, %v2893_v9  ;;  %v2960_v54 = vor.u32 %v3873_v14, %v2957_v17  ;;  %v3855_v23 = vld [vmem:[#allocation8 + $0x134] sm:$0xf]  ;;  %v2885_v27 = vld [vmem:[#allocation8 + $0x138] sm:$0xf0]  ;;  %v3865_v8 = vld [vmem:[#allocation8 + $0x184] sm:$0xf]  ;;  %v3024_v9 = vor.u32 %v3889_v2, %v3021_v3 }
 0x181   :  { %v2888_v41 = vor.u32 %v3855_v23, %v2885_v27  ;;  %v2925_v17 = vld [vmem:[#allocation8 + $0x188] sm:$0xf0]  ;;  %v3897_v2 = vld [vmem:[#allocation8 + $0x284] sm:$0xf] }
 0x182   :  { %v2928_v27 = vor.u32 %v3865_v8, %v2925_v17  ;;  %v3229_v44 = vld [vmem:[#allocation8 + $0x3e8] sm:$0xf0]  ;;  %v3975_v8 = vld [vmem:[#allocation8 + $0x4f4] sm:$0xf] }
 0x183   :  { %2309 = vmatpush.bf16.msrb.mxu0 %v2760_v28  ;;  %2322 = vmatpush.bf16.msrb.mxu1 %v2824_v34  ;;  %v3048_v28 = vor.u32 %v3895_v18, %v3045_v29  ;;  %v2949_v34 = vld [vmem:[#allocation8 + $0x1b8] sm:$0xf0]  ;;  %v3887_v18 = vld [vmem:[#allocation8 + $0x234] sm:$0xf]  ;;  %v3232_v49 = vor.u32 %v3941_v43, %v3229_v44 }
 0x184   :  { %2331 = vmatpush.bf16.msrb.mxu2 %v2920_v38  ;;  %2344 = vmatpush.bf16.msrb.mxu3 %v2984_v40  ;;  %v3909_v38 = vld [vmem:[#allocation8 + $0x2e4] sm:$0xf]  ;;  %v3101_v40 = vld [vmem:[#allocation8 + $0x2e8] sm:$0xf0]  ;;  %v2952_v42 = vor.u32 %v3871_v33, %v2949_v34  ;;  %v3013_v29 = vld [vmem:[#allocation8 + $0x238] sm:$0xf0] }
 0x185   :  { %2287 = vmatmul.bf16.vlgmr.msra.gmra.mxu2 %v4484_v47  ;;  %2300 = vmatmul.bf16.vlgmr.msra.gmra.mxu3 %v4486_v24  ;;  %v3104_v45 = vor.u32 %v3909_v38, %v3101_v40  ;;  %v3885_v33 = vld [vmem:[#allocation8 + $0x224] sm:$0xf]  ;;  %v3005_v34 = vld [vmem:[#allocation8 + $0x228] sm:$0xf0]  ;;  %v3955_v43 = vld [vmem:[#allocation8 + $0x454] sm:$0xf] }
 0x186   :  { %v3901_v38 = vld [vmem:[#allocation8 + $0x2a4] sm:$0xf]  ;;  %v3069_v40 = vld [vmem:[#allocation8 + $0x2a8] sm:$0xf0]  ;;  %v3285_v44 = vld [vmem:[#allocation8 + $0x458] sm:$0xf0] }
 0x187   :  { %2310 = vmatpush.bf16.msrb.mxu0 %v2752_v46  ;;  %2323 = vmatpush.bf16.msrb.mxu1 %v2816_v39  ;;  %v3869_v46 = vld [vmem:[#allocation8 + $0x1a4] sm:$0xf]  ;;  %v2941_v39 = vld [vmem:[#allocation8 + $0x1a8] sm:$0xf0] }
 0x188   :  { %2332 = vmatpush.bf16.msrb.mxu2 %v2912_v50  ;;  %2345 = vmatpush.bf16.msrb.mxu3 %v2976_v51  ;;  %v3907_v50 = vld [vmem:[#allocation8 + $0x2d4] sm:$0xf]  ;;  %v3093_v51 = vld [vmem:[#allocation8 + $0x2d8] sm:$0xf0]  ;;  %v2944_v53 = vor.u32 %v3869_v46, %v2941_v39 }
 0x189   :  { %v3096_v60 = vor.u32 %v3907_v50, %v3093_v51  ;;  %v3883_v46 = vld [vmem:[#allocation8 + $0x214] sm:$0xf]  ;;  %v2997_v39 = vld [vmem:[#allocation8 + $0x218] sm:$0xf0] }
 0x18a   :  { %v3899_v50 = vld [vmem:[#allocation8 + $0x294] sm:$0xf]  ;;  %v3061_v51 = vld [vmem:[#allocation8 + $0x298] sm:$0xf0] }
 0x18b   :  { %2311 = vmatpush.bf16.msrb.mxu0 %v2744_v62  ;;  %2324 = vmatpush.bf16.msrb.mxu1 %v2808_v63  ;;  %v3867_v62 = vld [vmem:[#allocation8 + $0x194] sm:$0xf]  ;;  %v2933_v63 = vld [vmem:[#allocation8 + $0x198] sm:$0xf0] }
 0x18c   :  { %2333 = vmatpush.bf16.msrb.mxu2 %v2904_v5  ;;  %2346 = vmatpush.bf16.msrb.mxu3 %v2968_v6  ;;  %v2936_v5 = vor.u32 %v3867_v62, %v2933_v63  ;;  %v3849_v6 = vld [vmem:[#allocation8 + $0x104] sm:$0xf]  ;;  %v2989_v63 = vld [vmem:[#allocation8 + $0x208] sm:$0xf0] }
 0x18d   :  { %v2864_v23 = vor.u32 %v3849_v6, %v2861_v7  ;;  %v3881_v62 = vld [vmem:[#allocation8 + $0x204] sm:$0xf]  ;;  %v3213_v6 = vld [vmem:[#allocation8 + $0x3c8] sm:$0xf0]  ;;  %v3301_v7 = vld [vmem:[#allocation8 + $0x478] sm:$0xf0] }
 0x18f   :  { %2312 = vmatpush.bf16.msrb.mxu0 %v2736_v13  ;;  %2325 = vmatpush.bf16.msrb.mxu1 %v2800_v19  ;;  %v3927_v13 = vld [vmem:[#allocation8 + $0x374] sm:$0xf]  ;;  %v3173_v19 = vld [vmem:[#allocation8 + $0x378] sm:$0xf0] }
 0x190   :  { %2334 = vmatpush.bf16.msrb.mxu2 %v2896_v22  ;;  %2347 = vmatpush.bf16.msrb.mxu3 %v2960_v54  ;;  %v3943_v22 = vld [vmem:[#allocation8 + $0x3f4] sm:$0xf]  ;;  %v3237_v54 = vld [vmem:[#allocation8 + $0x3f8] sm:$0xf0]  ;;  %v3176_v36 = vor.u32 %v3927_v13, %v3173_v19 }
 0x191   :  { %v3240_v37 = vor.u32 %v3943_v22, %v3237_v54  ;;  %v3935_v22 = vld [vmem:[#allocation8 + $0x3b4] sm:$0xf]  ;;  %v3205_v54 = vld [vmem:[#allocation8 + $0x3b8] sm:$0xf0] }
 0x192   :  { %2313 = vmatmul.bf16.vlgmr.msrb.gmra.mxu0 %v4408_v11  ;;  %2326 = vmatmul.bf16.vlgmr.msrb.gmra.mxu1 %v4410_v12  ;;  %v3905_v11 = vld [vmem:[#allocation8 + $0x2c4] sm:$0xf]  ;;  %v2872_v12 = vor.u32 %v3851_v57, %v2869_v58  ;;  %v3939_v57 = vld [vmem:[#allocation8 + $0x3d4] sm:$0xf]  ;;  %v3221_v58 = vld [vmem:[#allocation8 + $0x3d8] sm:$0xf0] }
 0x193   :  { %2357 = vmatpush.bf16.msra.mxu0 %v3048_v28  ;;  %2370 = vmatpush.bf16.msra.mxu1 %v3112_v31  ;;  %v3088_v14 = vor.u32 %v3905_v11, %v3085_v4  ;;  %v3016_v28 = vor.u32 %v3887_v18, %v3013_v29  ;;  %v3080_v31 = vor.u32 %v3903_v10, %v3077_v30  ;;  %v3053_v4 = vld [vmem:[#allocation8 + $0x288] sm:$0xf0]  ;;  %v3919_v10 = vld [vmem:[#allocation8 + $0x334] sm:$0xf]  ;;  %v3141_v30 = vld [vmem:[#allocation8 + $0x338] sm:$0xf0] }
 0x194   :  { %2335 = vmatpush.bf16.msrb.mxu2 %v2888_v41  ;;  %2348 = vmatpush.bf16.msrb.mxu3 %v2952_v42  ;;  %v3925_v41 = vld [vmem:[#allocation8 + $0x364] sm:$0xf]  ;;  %v3165_v42 = vld [vmem:[#allocation8 + $0x368] sm:$0xf0]  ;;  %v3224_v11 = vor.u32 %v3939_v57, %v3221_v58  ;;  %v3056_v17 = vor.u32 %v3897_v2, %v3053_v4  ;;  %v3189_v57 = vld [vmem:[#allocation8 + $0x398] sm:$0xf0] }
 0x195   :  { %v3168_v48 = vor.u32 %v3925_v41, %v3165_v42  ;;  %v3933_v41 = vld [vmem:[#allocation8 + $0x3a4] sm:$0xf]  ;;  %v3197_v42 = vld [vmem:[#allocation8 + $0x3a8] sm:$0xf0] }
 0x196   :  { %v3277_v58 = vld [vmem:[#allocation8 + $0x448] sm:$0xf0]  ;;  %v3913_v2 = vld [vmem:[#allocation8 + $0x304] sm:$0xf] }
 0x197   :  { %2358 = vmatpush.bf16.msra.mxu0 %v3040_v61  ;;  %2371 = vmatpush.bf16.msra.mxu1 %v3104_v45  ;;  %v3008_v61 = vor.u32 %v3885_v33, %v3005_v34  ;;  %v3072_v45 = vor.u32 %v3901_v38, %v3069_v40  ;;  %v3144_v33 = vor.u32 %v3919_v10, %v3141_v30 }
 0x198   :  { %2336 = vmatpush.bf16.msrb.mxu2 %v2880_v52  ;;  %2349 = vmatpush.bf16.msrb.mxu3 %v2944_v53  ;;  %v3923_v52 = vld [vmem:[#allocation8 + $0x354] sm:$0xf]  ;;  %v3157_v53 = vld [vmem:[#allocation8 + $0x358] sm:$0xf0]  ;;  %v3208_v34 = vor.u32 %v3935_v22, %v3205_v54  ;;  %v3949_v22 = vld [vmem:[#allocation8 + $0x424] sm:$0xf] }
 0x199   :  { %v3160_v3 = vor.u32 %v3923_v52, %v3157_v53  ;;  %v3288_v52 = vor.u32 %v3955_v43, %v3285_v44  ;;  %v3261_v54 = vld [vmem:[#allocation8 + $0x428] sm:$0xf0] }
 0x19b   :  { %2359 = vmatpush.bf16.msra.mxu0 %v3032_v59  ;;  %2372 = vmatpush.bf16.msra.mxu1 %v3096_v60  ;;  %v3000_v59 = vor.u32 %v3883_v46, %v2997_v39  ;;  %v3064_v60 = vor.u32 %v3899_v50, %v3061_v51  ;;  %v3200_v39 = vor.u32 %v3933_v41, %v3197_v42  ;;  %v3915_v50 = vld [vmem:[#allocation8 + $0x314] sm:$0xf]  ;;  %v3125_v51 = vld [vmem:[#allocation8 + $0x318] sm:$0xf0] }
 0x19c   :  { %2337 = vmatpush.bf16.msrb.mxu2 %v2872_v12  ;;  %2350 = vmatpush.bf16.msrb.mxu3 %v2936_v5  ;;  %v3921_v12 = vld [vmem:[#allocation8 + $0x344] sm:$0xf]  ;;  %v3149_v5 = vld [vmem:[#allocation8 + $0x348] sm:$0xf0]  ;;  %v3947_v41 = vld [vmem:[#allocation8 + $0x414] sm:$0xf] }
 0x19d   :  { %v3152_v18 = vor.u32 %v3921_v12, %v3149_v5  ;;  %v3181_v5 = vld [vmem:[#allocation8 + $0x388] sm:$0xf0]  ;;  %v3253_v42 = vld [vmem:[#allocation8 + $0x418] sm:$0xf0] }
 0x19f   :  { %2360 = vmatpush.bf16.msra.mxu0 %v3024_v9  ;;  %2373 = vmatpush.bf16.msra.mxu1 %v3088_v14  ;;  %v3365_v9 = vld [vmem:[#allocation8 + $0x4f8] sm:$0xf0]  ;;  %v2992_v14 = vor.u32 %v3881_v62, %v2989_v63  ;;  %v3128_v62 = vor.u32 %v3915_v50, %v3125_v51  ;;  %v4003_v50 = vld [vmem:[#allocation8 + $0x5d4] sm:$0xf] }
 0x1a0   :  { %2338 = vmatpush.bf16.msrb.mxu2 %v2864_v23  ;;  %2351 = vmatpush.bf16.msrb.mxu3 %v2928_v27  ;;  %v3368_v19 = vor.u32 %v3975_v8, %v3365_v9  ;;  %v3957_v23 = vld [vmem:[#allocation8 + $0x464] sm:$0xf]  ;;  %v3293_v27 = vld [vmem:[#allocation8 + $0x468] sm:$0xf0]  ;;  %v3991_v8 = vld [vmem:[#allocation8 + $0x574] sm:$0xf] }
 0x1a1   :  { %v3296_v38 = vor.u32 %v3957_v23, %v3293_v27  ;;  %v3429_v9 = vld [vmem:[#allocation8 + $0x578] sm:$0xf0] }
 0x1a2   :  { %v3432_v23 = vor.u32 %v3991_v8, %v3429_v9  ;;  %v3477_v51 = vld [vmem:[#allocation8 + $0x5d8] sm:$0xf0] }
 0x1a3   :  { %2361 = vmatpush.bf16.msra.mxu0 %v3016_v28  ;;  %2374 = vmatpush.bf16.msra.mxu1 %v3080_v31  ;;  %v3973_v28 = vld [vmem:[#allocation8 + $0x4e4] sm:$0xf]  ;;  %v3357_v31 = vld [vmem:[#allocation8 + $0x4e8] sm:$0xf0] }
 0x1a4   :  { %2383 = vmatpush.bf16.msra.mxu2 %v3176_v36  ;;  %2396 = vmatpush.bf16.msra.mxu3 %v3240_v37  ;;  %v3917_v36 = vld [vmem:[#allocation8 + $0x324] sm:$0xf]  ;;  %v3133_v37 = vld [vmem:[#allocation8 + $0x328] sm:$0xf0]  ;;  %v3360_v40 = vor.u32 %v3973_v28, %v3357_v31 }
 0x1a5   :  { %2339 = vmatmul.bf16.vlgmr.msrb.gmra.mxu2 %v4424_v55  ;;  %2352 = vmatmul.bf16.vlgmr.msrb.gmra.mxu3 %v4426_v56  ;;  %v3937_v55 = vld [vmem:[#allocation8 + $0x3c4] sm:$0xf]  ;;  %v3959_v56 = vld [vmem:[#allocation8 + $0x474] sm:$0xf]  ;;  %v3136_v46 = vor.u32 %v3917_v36, %v3133_v37  ;;  %v3325_v31 = vld [vmem:[#allocation8 + $0x4a8] sm:$0xf0] }
 0x1a6   :  { %v3216_v29 = vor.u32 %v3937_v55, %v3213_v6  ;;  %v3304_v13 = vor.u32 %v3959_v56, %v3301_v7  ;;  %v3951_v55 = vld [vmem:[#allocation8 + $0x434] sm:$0xf]  ;;  %v3269_v6 = vld [vmem:[#allocation8 + $0x438] sm:$0xf0]  ;;  %v3965_v28 = vld [vmem:[#allocation8 + $0x4a4] sm:$0xf] }
 0x1a7   :  { %2362 = vmatpush.bf16.msra.mxu0 %v3008_v61  ;;  %2375 = vmatpush.bf16.msra.mxu1 %v3072_v45  ;;  %v3971_v61 = vld [vmem:[#allocation8 + $0x4d4] sm:$0xf]  ;;  %v3349_v45 = vld [vmem:[#allocation8 + $0x4d8] sm:$0xf0]  ;;  %v4005_v36 = vld [vmem:[#allocation8 + $0x5e4] sm:$0xf] }
 0x1a8   :  { %2384 = vmatpush.bf16.msra.mxu2 %v3168_v48  ;;  %2397 = vmatpush.bf16.msra.mxu3 %v3232_v49  ;;  %v3352_v53 = vor.u32 %v3971_v61, %v3349_v45  ;;  %v3967_v56 = vld [vmem:[#allocation8 + $0x4b4] sm:$0xf]  ;;  %v3333_v7 = vld [vmem:[#allocation8 + $0x4b8] sm:$0xf0]  ;;  %v3485_v37 = vld [vmem:[#allocation8 + $0x5e8] sm:$0xf0] }
 0x1a9   :  { %v3488_v44 = vor.u32 %v4005_v36, %v3485_v37  ;;  %v3963_v61 = vld [vmem:[#allocation8 + $0x494] sm:$0xf]  ;;  %v3317_v45 = vld [vmem:[#allocation8 + $0x498] sm:$0xf0] }
 0x1ab   :  { %2363 = vmatpush.bf16.msra.mxu0 %v3000_v59  ;;  %2376 = vmatpush.bf16.msra.mxu1 %v3064_v60  ;;  %v3969_v59 = vld [vmem:[#allocation8 + $0x4c4] sm:$0xf]  ;;  %v3341_v60 = vld [vmem:[#allocation8 + $0x4c8] sm:$0xf0] }
 0x1ac   :  { %2385 = vmatpush.bf16.msra.mxu2 %v3160_v3  ;;  %2398 = vmatpush.bf16.msra.mxu3 %v3224_v11  ;;  %v3117_v3 = vld [vmem:[#allocation8 + $0x308] sm:$0xf0]  ;;  %v3929_v11 = vld [vmem:[#allocation8 + $0x384] sm:$0xf]  ;;  %v3344_v12 = vor.u32 %v3969_v59, %v3341_v60 }
 0x1ad   :  { %v3961_v59 = vld [vmem:[#allocation8 + $0x484] sm:$0xf] }
 0x1ae   :  { %v4496_v48 = vpop.f32.mrf.mxu0  ;;  %v4498_v49 = vpop.f32.mrf.mxu1 }
 0x1af   :  { %2364 = vmatpush.bf16.msra.mxu0 %v2992_v14  ;;  %2377 = vmatpush.bf16.msra.mxu1 %v3056_v17  ;;  %v4007_v14 = vld [vmem:[#allocation8 + $0x5f4] sm:$0xf]  ;;  %v3493_v17 = vld [vmem:[#allocation8 + $0x5f8] sm:$0xf0] }
 0x1b0   :  { %2386 = vmatpush.bf16.msra.mxu2 %v3152_v18  ;;  %2399 = vmatpush.bf16.msra.mxu3 %v3216_v29  ;;  %v3120_v18 = vor.u32 %v3913_v2, %v3117_v3  ;;  %v3184_v29 = vor.u32 %v3929_v11, %v3181_v5  ;;  %v3496_v27 = vor.u32 %v4007_v14, %v3493_v17  ;;  %v4001_v2 = vld [vmem:[#allocation8 + $0x5c4] sm:$0xf]  ;;  %v3469_v3 = vld [vmem:[#allocation8 + $0x5c8] sm:$0xf0]  ;;  %v4023_v11 = vld [vmem:[#allocation8 + $0x674] sm:$0xf] }
 0x1b1   :  { %v3621_v5 = vld [vmem:[#allocation8 + $0x6f8] sm:$0xf0]  ;;  %v3983_v14 = vld [vmem:[#allocation8 + $0x534] sm:$0xf] }
 0x1b2   :  { %2365 = vmatmul.bf16.vlgmr.msra.gmra.mxu0 %v4428_v0  ;;  %2378 = vmatmul.bf16.vlgmr.msra.gmra.mxu1 %v4430_v1  ;;  %v3931_v0 = vld [vmem:[#allocation8 + $0x394] sm:$0xf]  ;;  %v3953_v1 = vld [vmem:[#allocation8 + $0x444] sm:$0xf]  ;;  %v3397_v17 = vld [vmem:[#allocation8 + $0x538] sm:$0xf0] }
 0x1b3   :  { %2409 = vmatpush.bf16.msrb.mxu0 %v3304_v13  ;;  %2422 = vmatpush.bf16.msrb.mxu1 %v3368_v19  ;;  %v3192_v63 = vor.u32 %v3931_v0, %v3189_v57  ;;  %v3280_v4 = vor.u32 %v3953_v1, %v3277_v58  ;;  %v3272_v13 = vor.u32 %v3951_v55, %v3269_v6  ;;  %v3945_v1 = vld [vmem:[#allocation8 + $0x404] sm:$0xf]  ;;  %v3245_v58 = vld [vmem:[#allocation8 + $0x408] sm:$0xf0] }
 0x1b4   :  { %2387 = vmatpush.bf16.msra.mxu2 %v3144_v33  ;;  %2400 = vmatpush.bf16.msra.mxu3 %v3208_v34  ;;  %v3336_v19 = vor.u32 %v3967_v56, %v3333_v7  ;;  %v3989_v33 = vld [vmem:[#allocation8 + $0x564] sm:$0xf]  ;;  %v3421_v34 = vld [vmem:[#allocation8 + $0x568] sm:$0xf0]  ;;  %v3248_v55 = vor.u32 %v3945_v1, %v3245_v58  ;;  %v3472_v7 = vor.u32 %v4001_v2, %v3469_v3  ;;  %v3445_v1 = vld [vmem:[#allocation8 + $0x598] sm:$0xf0] }
 0x1b5   :  { %v3424_v43 = vor.u32 %v3989_v33, %v3421_v34  ;;  %v3981_v33 = vld [vmem:[#allocation8 + $0x524] sm:$0xf]  ;;  %v3389_v34 = vld [vmem:[#allocation8 + $0x528] sm:$0xf0] }
 0x1b6   :  { %v2108_v10 = vpop.f32.mrf.mxu0  ;;  %v2121_v30 = vpop.f32.mrf.mxu1  ;;  %v4017_v58 = vld [vmem:[#allocation8 + $0x644] sm:$0xf] }
 0x1b7   :  { %2410 = vmatpush.bf16.msrb.mxu0 %v3296_v38  ;;  %2423 = vmatpush.bf16.msrb.mxu1 %v3360_v40  ;;  %v3264_v38 = vor.u32 %v3949_v22, %v3261_v54  ;;  %v3328_v40 = vor.u32 %v3965_v28, %v3325_v31  ;;  %v3999_v10 = vld [vmem:[#allocation8 + $0x5b4] sm:$0xf]  ;;  %v3461_v30 = vld [vmem:[#allocation8 + $0x5b8] sm:$0xf0]  ;;  %v4037_v22 = vld [vmem:[#allocation8 + $0x6e4] sm:$0xf]  ;;  %v3400_v28 = vor.u32 %v3983_v14, %v3397_v17 }
 0x1b8   :  { %2388 = vmatpush.bf16.msra.mxu2 %v3136_v46  ;;  %2401 = vmatpush.bf16.msra.mxu3 %v3200_v39  ;;  %v3987_v46 = vld [vmem:[#allocation8 + $0x554] sm:$0xf]  ;;  %v3413_v39 = vld [vmem:[#allocation8 + $0x558] sm:$0xf0]  ;;  %v3613_v54 = vld [vmem:[#allocation8 + $0x6e8] sm:$0xf0]  ;;  %v3464_v31 = vor.u32 %v3999_v10, %v3461_v30 }
 0x1b9   :  { %v3416_v60 = vor.u32 %v3987_v46, %v3413_v39  ;;  %v3616_v37 = vor.u32 %v4037_v22, %v3613_v54  ;;  %v4031_v14 = vld [vmem:[#allocation8 + $0x6b4] sm:$0xf]  ;;  %v3589_v17 = vld [vmem:[#allocation8 + $0x6b8] sm:$0xf0] }
 0x1ba   :  { %v4071_v10 = vld [vmem:[#allocation8 + $0x7f4] sm:$0xf]  ;;  %v3749_v30 = vld [vmem:[#allocation8 + $0x7f8] sm:$0xf0]  ;;  %v3592_v54 = vor.u32 %v4031_v14, %v3589_v17 }
 0x1bb   :  { %2411 = vmatpush.bf16.msrb.mxu0 %v3288_v52  ;;  %2424 = vmatpush.bf16.msrb.mxu1 %v3352_v53  ;;  %v3256_v52 = vor.u32 %v3947_v41, %v3253_v42  ;;  %v3320_v53 = vor.u32 %v3963_v61, %v3317_v45  ;;  %v4019_v41 = vld [vmem:[#allocation8 + $0x654] sm:$0xf]  ;;  %v3541_v42 = vld [vmem:[#allocation8 + $0x658] sm:$0xf0]  ;;  %v4515_v61 = vld [vmem:[%s4556_s4] sm:$0x3]  ;;  %v3392_v45 = vor.u32 %v3981_v33, %v3389_v34 }
 0x1bc   :  { %2389 = vmatpush.bf16.msra.mxu2 %v3128_v62  ;;  %2402 = vmatpush.bf16.msra.mxu3 %v3192_v63  ;;  %v3309_v62 = vld [vmem:[#allocation8 + $0x488] sm:$0xf0]  ;;  %v3752_v34 = vor.u32 %v4071_v10, %v3749_v30  ;;  %v4047_v10 = vld [vmem:[#allocation8 + $0x734] sm:$0xf]  ;;  %v3653_v30 = vld [vmem:[#allocation8 + $0x738] sm:$0xf0] }
 0x1bd   :  { %v3405_v63 = vld [vmem:[#allocation8 + $0x548] sm:$0xf0]  ;;  %v3312_v6 = vor.u32 %v3961_v59, %v3309_v62  ;;  %v813_v62 = vperm.slane %v4515_v61, 0  ;;  %s4292_s4 = smov [#allocation11]  }
 0x1be   :  { %v3533_v59 = vld [vmem:[#allocation8 + $0x648] sm:$0xf0]  ;;  %s2683_s11 = sshll.u32 %s4292_s4, 4  ;;  %s2684_s11 = int_to_ptr.vmem [resolvable:$true] %s2683_s11 }
 0x1bf   :  { %2412 = vmatpush.bf16.msrb.mxu0 %v3280_v4  ;;  %2425 = vmatpush.bf16.msrb.mxu1 %v3344_v12  ;;  %v4502_v0 = vpop.f32.mrf.mxu0  ;;  %v4504_v57 = vpop.f32.mrf.mxu1  ;;  %v3557_v4 = vld [vmem:[#allocation8 + $0x678] sm:$0xf0]  ;;  %v4039_v12 = vld [vmem:[#allocation8 + $0x6f4] sm:$0xf] }
 0x1c0   :  { %2390 = vmatpush.bf16.msra.mxu2 %v3120_v18  ;;  %2403 = vmatpush.bf16.msra.mxu3 %v3184_v29  ;;  %v3560_v18 = vor.u32 %v4023_v11, %v3557_v4  ;;  %v3624_v29 = vor.u32 %v4039_v12, %v3621_v5  ;;  %v3977_v11 = vld [vmem:[#allocation8 + $0x504] sm:$0xf]  ;;  %v3373_v4 = vld [vmem:[#allocation8 + $0x508] sm:$0xf0]  ;;  %v3536_v5 = vor.u32 %v4017_v58, %v3533_v59  ;;  %v3669_v58 = vld [vmem:[#allocation8 + $0x758] sm:$0xf0] }
 0x1c1   :  { %v3993_v12 = vld [vmem:[#allocation8 + $0x584] sm:$0xf]  ;;  %v4067_v59 = vld [vmem:[#allocation8 + $0x7d4] sm:$0xf] }
 0x1c3   :  { %2413 = vmatpush.bf16.msrb.mxu0 %v3272_v13  ;;  %2426 = vmatpush.bf16.msrb.mxu1 %v3336_v19  ;;  %v4021_v13 = vld [vmem:[#allocation8 + $0x664] sm:$0xf]  ;;  %v3549_v19 = vld [vmem:[#allocation8 + $0x668] sm:$0xf0] }
 0x1c4   :  { %2435 = vmatpush.bf16.msrb.mxu2 %v3432_v23  ;;  %2448 = vmatpush.bf16.msrb.mxu3 %v3496_v27  ;;  %v4506_v8 = vpop.f32.mrf.mxu2  ;;  %v4508_v9 = vpop.f32.mrf.mxu3  ;;  %v3552_v36 = vor.u32 %v4021_v13, %v3549_v19  ;;  %v3376_v13 = vor.u32 %v3977_v11, %v3373_v4  ;;  %v4009_v4 = vld [vmem:[#allocation8 + $0x604] sm:$0xf] }
 0x1c5   :  { %2391 = vmatmul.bf16.vlgmr.msra.gmra.mxu2 %v4446_v15  ;;  %2404 = vmatmul.bf16.vlgmr.msra.gmra.mxu3 %v4448_v16  ;;  %v3480_v15 = vor.u32 %v4003_v50, %v3477_v51  ;;  %v3985_v16 = vld [vmem:[#allocation8 + $0x544] sm:$0xf]  ;;  %v3979_v51 = vld [vmem:[#allocation8 + $0x514] sm:$0xf] }
 0x1c6   :  { %v3408_v56 = vor.u32 %v3985_v16, %v3405_v63 }
 0x1c7   :  { %2414 = vmatpush.bf16.msrb.mxu0 %v3264_v38  ;;  %2427 = vmatpush.bf16.msrb.mxu1 %v3328_v40  ;;  %v2160_v23 = vpop.f32.mrf.mxu0  ;;  %v2173_v27 = vpop.f32.mrf.mxu1  ;;  %v3997_v38 = vld [vmem:[#allocation8 + $0x5a4] sm:$0xf]  ;;  %v3453_v40 = vld [vmem:[#allocation8 + $0x5a8] sm:$0xf0] }
 0x1c8   :  { %2436 = vmatpush.bf16.msrb.mxu2 %v3424_v43  ;;  %2449 = vmatpush.bf16.msrb.mxu3 %v3488_v44  ;;  %v4035_v43 = vld [vmem:[#allocation8 + $0x6d4] sm:$0xf]  ;;  %v3605_v44 = vld [vmem:[#allocation8 + $0x6d8] sm:$0xf0]  ;;  %v3456_v46 = vor.u32 %v3997_v38, %v3453_v40  ;;  %v4053_v38 = vld [vmem:[#allocation8 + $0x764] sm:$0xf]  ;;  %v2107_v40 = vadd.f32 %v4496_v48, %v813_v62 }
 0x1c9   :  { %v4051_v48 = vld [vmem:[#allocation8 + $0x754] sm:$0xf] }
 0x1cb   :  { %2415 = vmatpush.bf16.msrb.mxu0 %v3256_v52  ;;  %2428 = vmatpush.bf16.msrb.mxu1 %v3320_v53  ;;  %v3381_v52 = vld [vmem:[#allocation8 + $0x518] sm:$0xf0]  ;;  %v3995_v53 = vld [vmem:[#allocation8 + $0x594] sm:$0xf] }
 0x1cc   :  { %2437 = vmatpush.bf16.msrb.mxu2 %v3416_v60  ;;  %2450 = vmatpush.bf16.msrb.mxu3 %v3480_v15  ;;  %v2134_v39 = vpop.f32.mrf.mxu2  ;;  %v2147_v50 = vpop.f32.mrf.mxu3  ;;  %v4033_v60 = vld [vmem:[#allocation8 + $0x6c4] sm:$0xf]  ;;  %v3597_v15 = vld [vmem:[#allocation8 + $0x6c8] sm:$0xf0]  ;;  %v3384_v16 = vor.u32 %v3979_v51, %v3381_v52  ;;  %v3448_v63 = vor.u32 %v3995_v53, %v3445_v1  ;;  %v3509_v51 = vld [vmem:[#allocation8 + $0x618] sm:$0xf0]  ;;  %v2120_v1 = vadd.f32 %v4498_v49, %v2107_v40 }
 0x1cd   :  { %v4011_v50 = vld [vmem:[#allocation8 + $0x614] sm:$0xf]  ;;  %v3573_v53 = vld [vmem:[#allocation8 + $0x698] sm:$0xf0]  ;;  %v3672_v49 = vor.u32 %v4051_v48, %v3669_v58  ;;  %v3693_v58 = vld [vmem:[#allocation8 + $0x788] sm:$0xf0] }
 0x1ce   :  { %v3512_v62 = vor.u32 %v4011_v50, %v3509_v51  ;;  %v4079_v40 = vld [vmem:[#allocation10 + $0x30] sm:$0xff]  ;;  %v4078_v50 = vld [vmem:[#allocation10 + $0x28] sm:$0xff] }
 0x1cf   :  { %2416 = vmatpush.bf16.msrb.mxu0 %v3248_v55  ;;  %2429 = vmatpush.bf16.msrb.mxu1 %v3312_v6  ;;  %v4518_v2 = vpop.f32.mrf.mxu0  ;;  %v4520_v3 = vpop.f32.mrf.mxu1  ;;  %v3600_v55 = vor.u32 %v4033_v60, %v3597_v15  ;;  %v3437_v6 = vld [vmem:[#allocation8 + $0x588] sm:$0xf0]  ;;  %v3733_v60 = vld [vmem:[#allocation8 + $0x7d8] sm:$0xf0]  ;;  %v2133_v15 = vadd.f32 %v4506_v8, %v2120_v1  ;;  %v4057_v1 = vld [vmem:[#allocation8 + $0x784] sm:$0xf] }
 0x1d0   :  { %2438 = vmatpush.bf16.msrb.mxu2 %v3408_v56  ;;  %2451 = vmatpush.bf16.msrb.mxu3 %v3472_v7  ;;  %v4015_v56 = vld [vmem:[#allocation8 + $0x634] sm:$0xf]  ;;  %v3525_v7 = vld [vmem:[#allocation8 + $0x638] sm:$0xf0]  ;;  %v3440_v19 = vor.u32 %v3993_v12, %v3437_v6  ;;  %v3501_v12 = vld [vmem:[#allocation8 + $0x608] sm:$0xf0] }
 0x1d1   :  { %v3528_v22 = vor.u32 %v4015_v56, %v3525_v7  ;;  %v3661_v6 = vld [vmem:[#allocation8 + $0x748] sm:$0xf0]  ;;  %v4065_v56 = vld [vmem:[#allocation8 + $0x7c4] sm:$0xf]  ;;  %v2146_v8 = vadd.f32 %v4508_v9, %v2133_v15  ;;  %v3504_v14 = vor.u32 %v4009_v4, %v3501_v12  ;;  %v3656_v9 = vor.u32 %v4047_v10, %v3653_v30 }
 0x1d2   :  { %2417 = vmatmul.bf16.vlgmr.msrb.gmra.mxu0 %v4450_v20  ;;  %2430 = vmatmul.bf16.vlgmr.msrb.gmra.mxu1 %v4452_v21  ;;  %v3544_v20 = vor.u32 %v4019_v41, %v3541_v42  ;;  %v3608_v21 = vor.u32 %v4035_v43, %v3605_v44  ;;  %v3677_v41 = vld [vmem:[#allocation8 + $0x768] sm:$0xf0]  ;;  %v4069_v42 = vld [vmem:[#allocation8 + $0x7e4] sm:$0xf] }
 0x1d3   :  { %2461 = vmatpush.bf16.msra.mxu0 %v3560_v18  ;;  %2474 = vmatpush.bf16.msra.mxu1 %v3624_v29  ;;  %v4055_v18 = vld [vmem:[#allocation8 + $0x774] sm:$0xf]  ;;  %v3685_v29 = vld [vmem:[#allocation8 + $0x778] sm:$0xf0]  ;;  %v3741_v43 = vld [vmem:[#allocation8 + $0x7e8] sm:$0xf0]  ;;  %v3680_v52 = vor.u32 %v4053_v38, %v3677_v41 }
 0x1d4   :  { %2439 = vmatpush.bf16.msrb.mxu2 %v3400_v28  ;;  %2452 = vmatpush.bf16.msrb.mxu3 %v3464_v31  ;;  %v4522_v23 = vpop.f32.mrf.mxu2  ;;  %v4524_v27 = vpop.f32.mrf.mxu3  ;;  %v4013_v28 = vld [vmem:[#allocation8 + $0x624] sm:$0xf]  ;;  %v3517_v31 = vld [vmem:[#allocation8 + $0x628] sm:$0xf0]  ;;  %v3688_v33 = vor.u32 %v4055_v18, %v3685_v29 }
 0x1d5   :  { %v3725_v7 = vld [vmem:[#allocation8 + $0x7c8] sm:$0xf0] }
 0x1d6   :  { %v3728_v29 = vor.u32 %v4065_v56, %v3725_v7  ;;  %v3709_v38 = vld [vmem:[#allocation8 + $0x7a8] sm:$0xf0] }
 0x1d7   :  { %2462 = vmatpush.bf16.msra.mxu0 %v3552_v36  ;;  %2475 = vmatpush.bf16.msra.mxu1 %v3616_v37  ;;  %v4029_v36 = vld [vmem:[#allocation8 + $0x6a4] sm:$0xf]  ;;  %v3581_v37 = vld [vmem:[#allocation8 + $0x6a8] sm:$0xf0]  ;;  %v2212_v44 = vpop.f32.mrf.mxu0 }
 0x1d8   :  { %2440 = vmatpush.bf16.msrb.mxu2 %v3392_v45  ;;  %2453 = vmatpush.bf16.msrb.mxu3 %v3456_v46  ;;  %v2225_v45 = vpop.f32.mrf.mxu1  ;;  %v3520_v46 = vor.u32 %v4013_v28, %v3517_v31  ;;  %v3584_v39 = vor.u32 %v4029_v36, %v3581_v37  ;;  %v3645_v36 = vld [vmem:[#allocation8 + $0x728] sm:$0xf0]  ;;  %v4061_v37 = vld [vmem:[#allocation8 + $0x7a4] sm:$0xf]  ;;  %v3637_v44 = vld [vmem:[#allocation8 + $0x718] sm:$0xf0] }
 0x1d9   :  { %v4074_v12 = vld [vmem:[#allocation10 + $0x8] sm:$0xff] }
 0x1db   :  { %2463 = vmatpush.bf16.msra.mxu0 %v3544_v20  ;;  %2476 = vmatpush.bf16.msra.mxu1 %v3608_v21  ;;  %v3744_v20 = vor.u32 %v4069_v42, %v3741_v43  ;;  %v4027_v21 = vld [vmem:[#allocation8 + $0x694] sm:$0xf]  ;;  %v3712_v42 = vor.u32 %v4061_v37, %v3709_v38 }
 0x1dc   :  { %2441 = vmatpush.bf16.msrb.mxu2 %v3384_v16  ;;  %2454 = vmatpush.bf16.msrb.mxu3 %v3448_v63  ;;  %v3576_v16 = vor.u32 %v4027_v21, %v3573_v53  ;;  %v2186_v63 = vpop.f32.mrf.mxu2  ;;  %v2199_v11 = vpop.f32.mrf.mxu3  ;;  %v4043_v43 = vld [vmem:[#allocation8 + $0x714] sm:$0xf]  ;;  %v4041_v21 = vld [vmem:[#allocation8 + $0x704] sm:$0xf]  ;;  %v3629_v53 = vld [vmem:[#allocation8 + $0x708] sm:$0xf0] }
 0x1df   :  { %2464 = vmatpush.bf16.msra.mxu0 %v3536_v5  ;;  %2477 = vmatpush.bf16.msra.mxu1 %v3600_v55  ;;  %v3736_v5 = vor.u32 %v4067_v59, %v3733_v60  ;;  %v3565_v55 = vld [vmem:[#allocation8 + $0x688] sm:$0xf0]  ;;  %v3632_v59 = vor.u32 %v4041_v21, %v3629_v53  ;;  %v3696_v60 = vor.u32 %v4057_v1, %v3693_v58  ;;  %v4081_v21 = vld [vmem:[#allocation10 + $0x40] sm:$0xff] }
 0x1e0   :  { %2442 = vmatpush.bf16.msrb.mxu2 %v3376_v13  ;;  %2455 = vmatpush.bf16.msrb.mxu3 %v3440_v19  ;;  %v4063_v13 = vld [vmem:[#allocation8 + $0x7b4] sm:$0xf]  ;;  %v3717_v19 = vld [vmem:[#allocation8 + $0x7b8] sm:$0xf0] }
 0x1e1   :  { %v3720_v28 = vor.u32 %v4063_v13, %v3717_v19 }
 0x1e3   :  { %2465 = vmatpush.bf16.msra.mxu0 %v3528_v22  ;;  %2478 = vmatpush.bf16.msra.mxu1 %v3592_v54  ;;  %v4080_v22 = vld [vmem:[#allocation10 + $0x38] sm:$0xff]  ;;  %v2159_v54 = vadd.f32 %v4502_v0, %v2146_v8 }
 0x1e4   :  { %2487 = vmatpush.bf16.msra.mxu2 %v3688_v33  ;;  %2500 = vmatpush.bf16.msra.mxu3 %v3752_v34  ;;  %v4045_v34 = vld [vmem:[#allocation8 + $0x724] sm:$0xf] }
 0x1e5   :  { %2443 = vmatmul.bf16.vlgmr.msrb.gmra.mxu2 %v4460_v25  ;;  %2456 = vmatmul.bf16.vlgmr.msrb.gmra.mxu3 %v4462_v26  ;;  %v4025_v25 = vld [vmem:[#allocation8 + $0x684] sm:$0xf]  ;;  %v2172_v0 = vadd.f32 %v4504_v57, %v2159_v54  ;;  %v3648_v41 = vor.u32 %v4045_v34, %v3645_v36 }
 0x1e6   :  { %v4049_v26 = vld [vmem:[#allocation8 + $0x744] sm:$0xf]  ;;  %v3568_v17 = vor.u32 %v4025_v25, %v3565_v55 }
 0x1e7   :  { %2466 = vmatpush.bf16.msra.mxu0 %v3520_v46  ;;  %2479 = vmatpush.bf16.msra.mxu1 %v3584_v39  ;;  %v3664_v18 = vor.u32 %v4049_v26, %v3661_v6  ;;  %v2185_v45 = vadd.f32 %v4522_v23, %v2172_v0  ;;  %v4059_v46 = vld [vmem:[#allocation8 + $0x794] sm:$0xf]  ;;  %v3701_v39 = vld [vmem:[#allocation8 + $0x798] sm:$0xf0]  ;;  %v4077_v23 = vld [vmem:[#allocation10 + $0x20] sm:$0xff] }
 0x1e8   :  { %2488 = vmatpush.bf16.msra.mxu2 %v3680_v52  ;;  %2501 = vmatpush.bf16.msra.mxu3 %v3744_v20  ;;  %v2236_v31 = vpop.f32.mrf.mxu2  ;;  %v2249_v33 = vpop.f32.mrf.mxu3  ;;  %v4088_v0 = vld [vmem:[#allocation10 + $0x78] sm:$0xff] }
 0x1e9   :  { %v2198_v48 = vadd.f32 %v4524_v27, %v2185_v45  ;;  %v4075_v27 = vld [vmem:[#allocation10 + $0x10] sm:$0xff] }
 0x1ea   :  { %v4087_v45 = vld [vmem:[#allocation10 + $0x70] sm:$0xff] }
 0x1eb   :  { %2467 = vmatpush.bf16.msra.mxu0 %v3512_v62  ;;  %2480 = vmatpush.bf16.msra.mxu1 %v3576_v16  ;;  %v2211_v15 = vadd.f32 %v4518_v2, %v2198_v48  ;;  %v4076_v62 = vld [vmem:[#allocation10 + $0x18] sm:$0xff]  ;;  %v4073_v2 = vld [vmem:[#allocation10] sm:$0xff] }
 0x1ec   :  { %2489 = vmatpush.bf16.msra.mxu2 %v3672_v49  ;;  %2502 = vmatpush.bf16.msra.mxu3 %v3736_v5 }
 0x1ed   :  { %v2224_v11 = vadd.f32 %v4520_v3, %v2211_v15  ;;  %v814_v3 = vperm.slane %v4515_v61, 1 }
 0x1ef   :  { %2468 = vmatpush.bf16.msra.mxu0 %v3504_v14  ;;  %2481 = vmatpush.bf16.msra.mxu1 %v3568_v17  ;;  %v2262_v51 = vpop.f32.mrf.mxu0  ;;  %v2275_v52 = vpop.f32.mrf.mxu1  ;;  %v2237_v4 = vadd.f32 %v2236_v31, %v2224_v11 }
 0x1f0   :  { %2490 = vmatpush.bf16.msra.mxu2 %v3664_v18  ;;  %2503 = vmatpush.bf16.msra.mxu3 %v3728_v29  ;;  %v2238_v20 = vpop.f32.mrf.mxu2  ;;  %v2251_v57 = vpop.f32.mrf.mxu3 }
 0x1f1   :  { %v2250_v49 = vadd.f32 %v2249_v33, %v2237_v4 }
 0x1f2   :  { %2469 = vmatmul.bf16.vlgmr.msra.gmra.mxu0 %v4474_v32  ;;  %2482 = vmatmul.bf16.vlgmr.msra.gmra.mxu1 %v4476_v35  ;;  %v3640_v32 = vor.u32 %v4043_v43, %v3637_v44  ;;  %v3704_v35 = vor.u32 %v4059_v46, %v3701_v39  ;;  %v4086_v46 = vld [vmem:[#allocation10 + $0x68] sm:$0xff]  ;;  %v4085_v39 = vld [vmem:[#allocation10 + $0x60] sm:$0xff] }
 0x1f3   :  { %2651 = vmatpush.bf16.msrb.mxu0 %v4080_v22  ;;  %v2263_v5 = vadd.f32 %v2262_v51, %v2250_v49  ;;  %2664 = vmatpush.bf16.msrb.mxu1 %v4088_v0 }
 0x1f4   :  { %2491 = vmatpush.bf16.msra.mxu2 %v3656_v9  ;;  %2504 = vmatpush.bf16.msra.mxu3 %v3720_v28 }
 0x1f5   :  { %v2276_v25 = vadd.f32 %v2275_v52, %v2263_v5  ;;  %v4084_v52 = vld [vmem:[#allocation10 + $0x58] sm:$0xff] }
 0x1f7   :  { %2652 = vmatpush.bf16.msrb.mxu0 %v4079_v40  ;;  %v2264_v16 = vpop.f32.mrf.mxu0  ;;  %v2277_v63 = vpop.f32.mrf.mxu1  ;;  %2665 = vmatpush.bf16.msrb.mxu1 %v4087_v45 }
 0x1f8   :  { %2492 = vmatpush.bf16.msra.mxu2 %v3648_v41  ;;  %2505 = vmatpush.bf16.msra.mxu3 %v3712_v42 }
 0x1fb   :  { %2653 = vmatpush.bf16.msrb.mxu0 %v4078_v50  ;;  %2666 = vmatpush.bf16.msrb.mxu1 %v4086_v46 }
 0x1fc   :  { %2493 = vmatpush.bf16.msra.mxu2 %v3640_v32  ;;  %2506 = vmatpush.bf16.msra.mxu3 %v3704_v35  ;;  %v4083_v32 = vld [vmem:[#allocation10 + $0x50] sm:$0xff]  ;;  %v4082_v35 = vld [vmem:[#allocation10 + $0x48] sm:$0xff] }
 0x1ff   :  { %2654 = vmatpush.bf16.msrb.mxu0 %v4077_v23  ;;  %2667 = vmatpush.bf16.msrb.mxu1 %v4085_v39 }
 0x200   :  { %2494 = vmatpush.bf16.msra.mxu2 %v3632_v59  ;;  %2507 = vmatpush.bf16.msra.mxu3 %v3696_v60 }
 0x203   :  { %2655 = vmatpush.bf16.msrb.mxu0 %v4076_v62  ;;  %2495 = vmatmul.bf16.vlgmr.msra.gmra.mxu2 %v4484_v47 }
 0x204   :  { %2508 = vmatmul.bf16.vlgmr.msra.gmra.mxu3 %v4486_v24  ;;  %2668 = vmatpush.bf16.msrb.mxu1 %v4084_v52 }
 0x207   :  { %2656 = vmatpush.bf16.msrb.mxu0 %v4075_v27 }
 0x208   :  { %v2288_v55 = vpop.f32.mrf.mxu2  ;;  %v2301_v26 = vpop.f32.mrf.mxu3  ;;  %2669 = vmatpush.bf16.msrb.mxu1 %v4083_v32 }
 0x209   :  { %v2289_v6 = vadd.f32 %v2288_v55, %v2276_v25 }
 0x20b   :  { %2657 = vmatpush.bf16.msrb.mxu0 %v4074_v12  ;;  %v2302_v56 = vadd.f32 %v2301_v26, %v2289_v6 }
 0x20c   :  { %2670 = vmatpush.bf16.msrb.mxu1 %v4082_v35 }
 0x20d   :  { %2513 = vst [vmem:[#allocation11] sm:$0xff] %v2302_v56  ;;  %v2515_v7 = vmax.f32 %v2302_v56, 0.0 }
 0x20f   :  { %2658 = vmatpush.bf16.msrb.mxu0 %v4073_v2  ;;  %v2517_v8 = vpack.c.bf16 %v2515_v7, %v2515_v7  ;;  %v2314_v47 = vpop.f32.mrf.mxu0  ;;  %v2327_v14 = vpop.f32.mrf.mxu1  ;;  %v4102_v7 = vld [vmem:[%s4558_s6] ss:$0 sm:$0xff] }
 0x210   :  { %v2315_v24 = vadd.f32 %v2314_v47, %v814_v3  ;;  %v2290_v17 = vpop.f32.mrf.mxu2  ;;  %v2303_v18 = vpop.f32.mrf.mxu3  ;;  %2671 = vmatpush.bf16.msrb.mxu1 %v4081_v21 }
 0x212   :  { %2659 = vmatmul.bf16.vlgmr.msrb.gmra.mxu0 %v2517_v8  ;;  %v2328_v29 = vadd.f32 %v2327_v14, %v2315_v24 }
 0x217   :  { %v2316_v10 = vpop.f32.mrf.mxu0  ;;  %v2329_v30 = vpop.f32.mrf.mxu1 }
 0x228   :  { %v2340_v13 = vpop.f32.mrf.mxu2  ;;  %v2353_v19 = vpop.f32.mrf.mxu3 }
 0x229   :  { %v2341_v22 = vadd.f32 %v2340_v13, %v2328_v29 }
 0x22b   :  { %v2354_v54 = vadd.f32 %v2353_v19, %v2341_v22 }
 0x22f   :  { %v2366_v9 = vpop.f32.mrf.mxu0  ;;  %v2379_v28 = vpop.f32.mrf.mxu1 }
 0x230   :  { %v2367_v31 = vadd.f32 %v2366_v9, %v2354_v54  ;;  %v2342_v61 = vpop.f32.mrf.mxu2  ;;  %v2355_v33 = vpop.f32.mrf.mxu3 }
 0x232   :  { %v2380_v34 = vadd.f32 %v2379_v28, %v2367_v31 }
 0x237   :  { %v2368_v36 = vpop.f32.mrf.mxu0  ;;  %v2381_v37 = vpop.f32.mrf.mxu1 }
 0x248   :  { %v2392_v38 = vpop.f32.mrf.mxu2  ;;  %v2405_v40 = vpop.f32.mrf.mxu3 }
 0x249   :  { %v2393_v53 = vadd.f32 %v2392_v38, %v2380_v34 }
 0x24b   :  { %v2406_v59 = vadd.f32 %v2405_v40, %v2393_v53 }
 0x24f   :  { %v2418_v41 = vpop.f32.mrf.mxu0  ;;  %v2431_v42 = vpop.f32.mrf.mxu1 }
 0x250   :  { %v2394_v43 = vpop.f32.mrf.mxu2  ;;  %v2407_v44 = vpop.f32.mrf.mxu3  ;;  %v2419_v60 = vadd.f32 %v2418_v41, %v2406_v59 }
 0x252   :  { %v2432_v16 = vadd.f32 %v2431_v42, %v2419_v60 }
 0x257   :  { %v2420_v50 = vpop.f32.mrf.mxu0  ;;  %v2433_v51 = vpop.f32.mrf.mxu1 }
 0x268   :  { %v2444_v20 = vpop.f32.mrf.mxu2  ;;  %v2457_v57 = vpop.f32.mrf.mxu3 }
 0x269   :  { %v2445_v63 = vadd.f32 %v2444_v20, %v2432_v16 }
 0x26b   :  { %v2458_v11 = vadd.f32 %v2457_v57, %v2445_v63 }
 0x26f   :  { %v2470_v48 = vpop.f32.mrf.mxu0  ;;  %v2483_v1 = vpop.f32.mrf.mxu1 }
 0x270   :  { %v2446_v58 = vpop.f32.mrf.mxu2  ;;  %v2459_v23 = vpop.f32.mrf.mxu3  ;;  %v2471_v27 = vadd.f32 %v2470_v48, %v2458_v11 }
 0x272   :  { %v2484_v4 = vadd.f32 %v2483_v1, %v2471_v27 }
 0x277   :  { %v2472_v15 = vpop.f32.mrf.mxu0  ;;  %v2485_v62 = vpop.f32.mrf.mxu1 }
 0x286   :  { %v2496_v12 = vpop.f32.mrf.mxu2 }
 0x287   :  { %v2509_v49 = vpop.f32.mrf.mxu3  ;;  %v2497_v5 = vadd.f32 %v2496_v12, %v2484_v4 }
 0x289   :  { %v2510_v2 = vadd.f32 %v2509_v49, %v2497_v5 }
 0x28b   :  { %2514 = vst [vmem:[#allocation11 + $0x8] sm:$0xff] %v2510_v2  ;;  %v2516_v25 = vmax.f32 %v2510_v2, 0.0 }
 0x28c   :  { %2688 = dma.vmem_to_hbm [thread:$0]  %s2684_s11, 256, %s2686_s14, [#allocation4]  }
 0x28d   :  { %v2518_v55 = vpack.c.bf16 %v2516_v25, %v2516_v25 }
 0x28e   :  { %v2498_v26 = vpop.f32.mrf.mxu2 }
 0x28f   :  { %v2511_v6 = vpop.f32.mrf.mxu3  ;;  %2672 = vmatmul.bf16.vlgmr.msrb.gmra.mxu1 %v2518_v55  ;;  %v2660_v56 = vpop.f32.mrf.mxu0 }
 0x290   :  { %v2661_v8 = vadd.f32 %v4102_v7, %v2660_v56 }
 0x297   :  { %v2662_v3 = vpop.f32.mrf.mxu0 }
 0x30c   :  { %v2673_v47 = vpop.f32.mrf.mxu1 }
 0x30d   :  { %v2674_v14 = vadd.f32 %v2673_v47, %v2661_v8 }
 0x30f   :  { %2677 = vst [vmem:[#allocation12] sm:$0xff] %v2674_v14 }
 0x310   :  { %2699 = dma.vmem_to_hbm [thread:$0]  %s2695_s18, 128, %s2697_s20, [#allocation13]  }
 0x314   :  { %v2675_v24 = vpop.f32.mrf.mxu1 }
 0x315   :  { %4277 = dma.done.wait [#allocation4], 256  }
 0x316   :  { %4278 = vsyncadd [#allocation4], 4294967040 }
 0x317   :  { %4279 = dma.done.wait [#allocation13], 128  }
 0x318   :  { %4280 = vsyncadd [#allocation13], 4294967168 }
 0x319   :  { %2708 = vsyncpa [#allocation3], 1 }
 0x31a   :  { %2709 = vsyncpa [#allocation6], 1 }
 0x31b   :  { %2710 = vsyncpa [#allocation9], 1 }
 0x31c   :  { %2711 = vsyncpa [#allocation4], 1 }
 0x31d   :  { %2712 = vsyncpa [#allocation13], 1 }

</bundles_post_ra>
